<compile_context>
chip_gen: v7x
topology: tpu7x:2x2x1
jax: 0.10.0
libtpu: 0.0.40
codegen_flags: <defaults>
</compile_context>

<pallas_src>
import jax
import jax.numpy as jnp
from jax.experimental import pallas as pl
from jax.experimental.pallas import tpu as pltpu


LATENT_SIZE = 48
OUT_DIM = 3 + 6 + 2            # 11
OUT_PAD = 128                  # lane-dense padded output width
HIDDEN_DIMS = [512, 512, 512, 512, OUT_DIM]


def _round_up(x, m):
    return (x + m - 1) // m * m


def decoder_mlp_kernel(xp_ref, z_ref,
                       w0a_ref, w0b_ref, b0_ref,
                       w1_ref, b1_ref,
                       w2_ref, b2_ref,
                       w3_ref, b3_ref,
                       w4_ref, b4_ref,
                       o_ref):
    """Five chained Linear + ReLU layers; concat fused into the first layer."""
    f32 = jnp.float32
    bf16 = jnp.bfloat16

    # Layer 0: concat([x_past, z]) @ W0  ==  x_past @ W0a + z @ W0b  (fused).
    h = jnp.dot(xp_ref[...].astype(bf16), w0a_ref[...], preferred_element_type=f32)
    h = h + jnp.dot(z_ref[...].astype(bf16), w0b_ref[...], preferred_element_type=f32)
    h = jnp.maximum(h + b0_ref[...], 0.0)

    for w_ref, b_ref in ((w1_ref, b1_ref), (w2_ref, b2_ref),
                         (w3_ref, b3_ref), (w4_ref, b4_ref)):
        h = jnp.dot(h.astype(bf16), w_ref[...], preferred_element_type=f32)
        h = jnp.maximum(h + b_ref[...], 0.0)   # ReLU after every layer (see TODO)

    o_ref[...] = h.astype(o_ref.dtype)


def init_decoder_params(in_dim, key):
    """nn.Linear-style init (U[-1/sqrt(fan_in), 1/sqrt(fan_in)]), f32 master copy."""
    cur_dim = in_dim + 256 + LATENT_SIZE
    dims = [cur_dim] + HIDDEN_DIMS
    layers = []
    for i in range(len(HIDDEN_DIMS)):
        key, kw, kb = jax.random.split(key, 3)
        fan_in, fan_out = dims[i], dims[i + 1]
        bound = float(1.0 / (fan_in ** 0.5))
        w = jax.random.uniform(kw, (fan_in, fan_out), jnp.float32, -bound, bound)
        b = jax.random.uniform(kb, (fan_out,), jnp.float32, -bound, bound)
        layers.append((w, b))
    return layers


def pack_decoder_params(layers):
    """Kernel-ready params: bf16 weights, W0 split for fused concat, last layer padded."""
    w0, b0 = layers[0]
    x_past_dim = w0.shape[0] - LATENT_SIZE
    packed = [
        w0[:x_past_dim].astype(jnp.bfloat16),            # w0a: (in_dim+256, 512)
        w0[x_past_dim:].astype(jnp.bfloat16),            # w0b: (48, 512)
        b0.reshape(1, -1).astype(jnp.float32),
    ]
    for i in range(1, len(layers) - 1):
        w, b = layers[i]
        packed += [w.astype(jnp.bfloat16), b.reshape(1, -1).astype(jnp.float32)]
    w4, b4 = layers[-1]
    w4p = jnp.pad(w4, ((0, 0), (0, OUT_PAD - w4.shape[1]))).astype(jnp.bfloat16)
    b4p = jnp.pad(b4, (0, OUT_PAD - b4.shape[0])).reshape(1, -1).astype(jnp.float32)
    packed += [w4p, b4p]
    return tuple(packed)


def decoder_forward(x_past, z, packed, *, batch_tile=256):
    """x_past: (B, in_dim + 256), z: (B, 48)  ->  (B, 1, 11)."""
    B, xp_dim = x_past.shape
    assert z.shape == (B, LATENT_SIZE)

    tb = min(batch_tile, _round_up(B, 8))
    b_pad = _round_up(B, tb)
    xp = jnp.pad(x_past.astype(jnp.float32), ((0, b_pad - B), (0, 0)))
    zz = jnp.pad(z.astype(jnp.float32), ((0, b_pad - B), (0, 0)))

    w0a, w0b, b0, w1, b1, w2, b2, w3, b3, w4, b4 = packed

    def _resident(arr):
        # Constant block index across the batch grid -> DMA'd once, stays in VMEM.
        ndim = arr.ndim
        return pl.BlockSpec(arr.shape, lambda i, _n=ndim: (0,) * _n)

    in_specs = [
        pl.BlockSpec((tb, xp_dim), lambda i: (i, 0)),        # x_past batch tile
        pl.BlockSpec((tb, LATENT_SIZE), lambda i: (i, 0)),   # z batch tile
        _resident(w0a), _resident(w0b), _resident(b0),
        _resident(w1), _resident(b1),
        _resident(w2), _resident(b2),
        _resident(w3), _resident(b3),
        _resident(w4), _resident(b4),
    ]
    out_spec = pl.BlockSpec((tb, OUT_PAD), lambda i: (i, 0))

    out = pl.pallas_call(
        decoder_mlp_kernel,
        out_shape=jax.ShapeDtypeStruct((b_pad, OUT_PAD), jnp.float32),
        grid_spec=pltpu.PrefetchScalarGridSpec(
            num_scalar_prefetch=0,
            grid=(b_pad // tb,),
            in_specs=in_specs,
            out_specs=out_spec,
        ),
        compiler_params=pltpu.CompilerParams(
            dimension_semantics=("parallel",),
        ),
    )(xp, zz, *packed)

    return out[:B, :OUT_DIM].reshape(B, 1, OUT_DIM)


def decoder_forward_ref(x_past, z, packed):
    """Plain-JAX mirror of the kernel math (bf16 weights/activations, f32 acc)."""
    w0a, w0b, b0, w1, b1, w2, b2, w3, b3, w4, b4 = packed
    f32, bf16 = jnp.float32, jnp.bfloat16
    h = jnp.dot(x_past.astype(bf16), w0a, preferred_element_type=f32)
    h = h + jnp.dot(z.astype(bf16), w0b, preferred_element_type=f32)
    h = jnp.maximum(h + b0, 0.0)
    for w, b in ((w1, b1), (w2, b2), (w3, b3), (w4, b4)):
        h = jnp.maximum(jnp.dot(h.astype(bf16), w, preferred_element_type=f32) + b, 0.0)
    return h[:, :OUT_DIM].reshape(h.shape[0], 1, OUT_DIM)


if __name__ == "__main__":
    B = 2
    in_dim = 16                       # free parameter of the module
    x_past_dim = in_dim + 256         # x_past carries the +256 context features

    key = jax.random.PRNGKey(0)
    k_params, k_x, k_z = jax.random.split(key, 3)

    layers = init_decoder_params(in_dim, k_params)
    packed = pack_decoder_params(layers)

    x_past = jax.random.normal(k_x, (B, x_past_dim), jnp.float32)
    z = jax.random.normal(k_z, (B, LATENT_SIZE), jnp.float32)

    out = decoder_forward(x_past, z, packed)
    out = jax.block_until_ready(out)

    ref = decoder_forward_ref(x_past, z, packed)
    assert out.shape == (B, 1, OUT_DIM), out.shape
    err = float(jnp.max(jnp.abs(out - ref)))
    assert jnp.allclose(out, ref, atol=2e-3, rtol=2e-3), f"mismatch vs JAX ref: {err}"

    print("KERNEL_OK")
</pallas_src>

<mosaic_0001>
module attributes {stable_mosaic.version = 11 : i64} {
  func.func @decoder_mlp_kernel(%arg0: i32, %arg1: memref<8x272xf32, #tpu.memory_space<vmem>>, %arg2: memref<8x48xf32, #tpu.memory_space<vmem>>, %arg3: memref<272x512xbf16, #tpu.memory_space<vmem>>, %arg4: memref<48x512xbf16, #tpu.memory_space<vmem>>, %arg5: memref<1x512xf32, #tpu.memory_space<vmem>>, %arg6: memref<512x512xbf16, #tpu.memory_space<vmem>>, %arg7: memref<1x512xf32, #tpu.memory_space<vmem>>, %arg8: memref<512x512xbf16, #tpu.memory_space<vmem>>, %arg9: memref<1x512xf32, #tpu.memory_space<vmem>>, %arg10: memref<512x512xbf16, #tpu.memory_space<vmem>>, %arg11: memref<1x512xf32, #tpu.memory_space<vmem>>, %arg12: memref<512x128xbf16, #tpu.memory_space<vmem>>, %arg13: memref<1x128xf32, #tpu.memory_space<vmem>>, %arg14: memref<8x128xf32, #tpu.memory_space<vmem>>) attributes {dimension_semantics = [#tpu.dimension_semantics<parallel>], iteration_bounds = array<i64: 1>, scalar_prefetch = 0 : i64, scratch_operands = 0 : i64, tpu.core_type = #tpu.core_type<tc>, window_params = [{transform_indices = @transform_0, window_bounds = array<i64: 8, 272>}, {transform_indices = @transform_1, window_bounds = array<i64: 8, 48>}, {pipeline_mode = #tpu.pipeline_mode<synchronous>, transform_indices = @transform_2, window_bounds = array<i64: 272, 512>}, {pipeline_mode = #tpu.pipeline_mode<synchronous>, transform_indices = @transform_3, window_bounds = array<i64: 48, 512>}, {pipeline_mode = #tpu.pipeline_mode<synchronous>, transform_indices = @transform_4, window_bounds = array<i64: 1, 512>}, {pipeline_mode = #tpu.pipeline_mode<synchronous>, transform_indices = @transform_5, window_bounds = array<i64: 512, 512>}, {pipeline_mode = #tpu.pipeline_mode<synchronous>, transform_indices = @transform_6, window_bounds = array<i64: 1, 512>}, {pipeline_mode = #tpu.pipeline_mode<synchronous>, transform_indices = @transform_7, window_bounds = array<i64: 512, 512>}, {pipeline_mode = #tpu.pipeline_mode<synchronous>, transform_indices = @transform_8, window_bounds = array<i64: 1, 512>}, {pipeline_mode = #tpu.pipeline_mode<synchronous>, transform_indices = @transform_9, window_bounds = array<i64: 512, 512>}, {pipeline_mode = #tpu.pipeline_mode<synchronous>, transform_indices = @transform_10, window_bounds = array<i64: 1, 512>}, {pipeline_mode = #tpu.pipeline_mode<synchronous>, transform_indices = @transform_11, window_bounds = array<i64: 512, 128>}, {pipeline_mode = #tpu.pipeline_mode<synchronous>, transform_indices = @transform_12, window_bounds = array<i64: 1, 128>}, {transform_indices = @transform_13, window_bounds = array<i64: 8, 128>}]} {
    %c0 = arith.constant 0 : index
    %c0_0 = arith.constant 0 : index
    %0 = vector.load %arg1[%c0, %c0_0] : memref<8x272xf32, #tpu.memory_space<vmem>>, vector<8x272xf32>
    %1 = arith.truncf %0 : vector<8x272xf32> to vector<8x272xbf16>
    %c0_1 = arith.constant 0 : index
    %c0_2 = arith.constant 0 : index
    %2 = vector.load %arg3[%c0_1, %c0_2] : memref<272x512xbf16, #tpu.memory_space<vmem>>, vector<272x512xbf16>
    %cst = arith.constant dense<0.000000e+00> : vector<8x512xf32>
    %3 = tpu.matmul %1, %2, %cst {dimension_numbers = #tpu.dot_dimension_numbers<[1], [0], [0], [1], [0, 0, 1, 1], [], []>} : vector<8x272xbf16>, vector<272x512xbf16>, vector<8x512xf32> -> vector<8x512xf32>
    %c0_3 = arith.constant 0 : index
    %c0_4 = arith.constant 0 : index
    %4 = vector.load %arg2[%c0_3, %c0_4] : memref<8x48xf32, #tpu.memory_space<vmem>>, vector<8x48xf32>
    %5 = arith.truncf %4 : vector<8x48xf32> to vector<8x48xbf16>
    %c0_5 = arith.constant 0 : index
    %c0_6 = arith.constant 0 : index
    %6 = vector.load %arg4[%c0_5, %c0_6] : memref<48x512xbf16, #tpu.memory_space<vmem>>, vector<48x512xbf16>
    %cst_7 = arith.constant dense<0.000000e+00> : vector<8x512xf32>
    %7 = tpu.matmul %5, %6, %cst_7 {dimension_numbers = #tpu.dot_dimension_numbers<[1], [0], [0], [1], [0, 0, 1, 1], [], []>} : vector<8x48xbf16>, vector<48x512xbf16>, vector<8x512xf32> -> vector<8x512xf32>
    %8 = arith.addf %3, %7 : vector<8x512xf32>
    %c0_8 = arith.constant 0 : index
    %c0_9 = arith.constant 0 : index
    %9 = vector.load %arg5[%c0_8, %c0_9] : memref<1x512xf32, #tpu.memory_space<vmem>>, vector<1x512xf32>
    %10 = vector.broadcast %9 : vector<1x512xf32> to vector<8x512xf32>
    %11 = arith.addf %8, %10 : vector<8x512xf32>
    %cst_10 = arith.constant 0.000000e+00 : f32
    %12 = vector.broadcast %cst_10 : f32 to vector<8x512xf32>
    %13 = arith.maximumf %11, %12 : vector<8x512xf32>
    %14 = arith.truncf %13 : vector<8x512xf32> to vector<8x512xbf16>
    %c0_11 = arith.constant 0 : index
    %c0_12 = arith.constant 0 : index
    %15 = vector.load %arg6[%c0_11, %c0_12] : memref<512x512xbf16, #tpu.memory_space<vmem>>, vector<512x512xbf16>
    %cst_13 = arith.constant dense<0.000000e+00> : vector<8x512xf32>
    %16 = tpu.matmul %14, %15, %cst_13 {dimension_numbers = #tpu.dot_dimension_numbers<[1], [0], [0], [1], [0, 0, 1, 1], [], []>} : vector<8x512xbf16>, vector<512x512xbf16>, vector<8x512xf32> -> vector<8x512xf32>
    %c0_14 = arith.constant 0 : index
    %c0_15 = arith.constant 0 : index
    %17 = vector.load %arg7[%c0_14, %c0_15] : memref<1x512xf32, #tpu.memory_space<vmem>>, vector<1x512xf32>
    %18 = vector.broadcast %17 : vector<1x512xf32> to vector<8x512xf32>
    %19 = arith.addf %16, %18 : vector<8x512xf32>
    %cst_16 = arith.constant 0.000000e+00 : f32
    %20 = vector.broadcast %cst_16 : f32 to vector<8x512xf32>
    %21 = arith.maximumf %19, %20 : vector<8x512xf32>
    %22 = arith.truncf %21 : vector<8x512xf32> to vector<8x512xbf16>
    %c0_17 = arith.constant 0 : index
    %c0_18 = arith.constant 0 : index
    %23 = vector.load %arg8[%c0_17, %c0_18] : memref<512x512xbf16, #tpu.memory_space<vmem>>, vector<512x512xbf16>
    %cst_19 = arith.constant dense<0.000000e+00> : vector<8x512xf32>
    %24 = tpu.matmul %22, %23, %cst_19 {dimension_numbers = #tpu.dot_dimension_numbers<[1], [0], [0], [1], [0, 0, 1, 1], [], []>} : vector<8x512xbf16>, vector<512x512xbf16>, vector<8x512xf32> -> vector<8x512xf32>
    %c0_20 = arith.constant 0 : index
    %c0_21 = arith.constant 0 : index
    %25 = vector.load %arg9[%c0_20, %c0_21] : memref<1x512xf32, #tpu.memory_space<vmem>>, vector<1x512xf32>
    %26 = vector.broadcast %25 : vector<1x512xf32> to vector<8x512xf32>
    %27 = arith.addf %24, %26 : vector<8x512xf32>
    %cst_22 = arith.constant 0.000000e+00 : f32
    %28 = vector.broadcast %cst_22 : f32 to vector<8x512xf32>
    %29 = arith.maximumf %27, %28 : vector<8x512xf32>
    %30 = arith.truncf %29 : vector<8x512xf32> to vector<8x512xbf16>
    %c0_23 = arith.constant 0 : index
    %c0_24 = arith.constant 0 : index
    %31 = vector.load %arg10[%c0_23, %c0_24] : memref<512x512xbf16, #tpu.memory_space<vmem>>, vector<512x512xbf16>
    %cst_25 = arith.constant dense<0.000000e+00> : vector<8x512xf32>
    %32 = tpu.matmul %30, %31, %cst_25 {dimension_numbers = #tpu.dot_dimension_numbers<[1], [0], [0], [1], [0, 0, 1, 1], [], []>} : vector<8x512xbf16>, vector<512x512xbf16>, vector<8x512xf32> -> vector<8x512xf32>
    %c0_26 = arith.constant 0 : index
    %c0_27 = arith.constant 0 : index
    %33 = vector.load %arg11[%c0_26, %c0_27] : memref<1x512xf32, #tpu.memory_space<vmem>>, vector<1x512xf32>
    %34 = vector.broadcast %33 : vector<1x512xf32> to vector<8x512xf32>
    %35 = arith.addf %32, %34 : vector<8x512xf32>
    %cst_28 = arith.constant 0.000000e+00 : f32
    %36 = vector.broadcast %cst_28 : f32 to vector<8x512xf32>
    %37 = arith.maximumf %35, %36 : vector<8x512xf32>
    %38 = arith.truncf %37 : vector<8x512xf32> to vector<8x512xbf16>
    %c0_29 = arith.constant 0 : index
    %c0_30 = arith.constant 0 : index
    %39 = vector.load %arg12[%c0_29, %c0_30] : memref<512x128xbf16, #tpu.memory_space<vmem>>, vector<512x128xbf16>
    %cst_31 = arith.constant dense<0.000000e+00> : vector<8x128xf32>
    %40 = tpu.matmul %38, %39, %cst_31 {dimension_numbers = #tpu.dot_dimension_numbers<[1], [0], [0], [1], [0, 0, 1, 1], [], []>} : vector<8x512xbf16>, vector<512x128xbf16>, vector<8x128xf32> -> vector<8x128xf32>
    %c0_32 = arith.constant 0 : index
    %c0_33 = arith.constant 0 : index
    %41 = vector.load %arg13[%c0_32, %c0_33] : memref<1x128xf32, #tpu.memory_space<vmem>>, vector<1x128xf32>
    %42 = vector.broadcast %41 : vector<1x128xf32> to vector<8x128xf32>
    %43 = arith.addf %40, %42 : vector<8x128xf32>
    %cst_34 = arith.constant 0.000000e+00 : f32
    %44 = vector.broadcast %cst_34 : f32 to vector<8x128xf32>
    %45 = arith.maximumf %43, %44 : vector<8x128xf32>
    %c0_35 = arith.constant 0 : index
    %c0_36 = arith.constant 0 : index
    %46 = vector.load %arg14[%c0_35, %c0_36] : memref<8x128xf32, #tpu.memory_space<vmem>>, vector<8x128xf32>
    tpu.vector_store %arg14[%c0_35, %c0_36], %45 {strides = array<i32>} : memref<8x128xf32, #tpu.memory_space<vmem>>, vector<8x128xf32>,
    return
  }
  func.func @transform_0(%arg0: i32) -> (i32, i32) {
    %c0_i32 = arith.constant 0 : i32
    %c0_i32_0 = arith.constant 0 : i32
    return %arg0, %c0_i32 : i32, i32
  }
  func.func @transform_1(%arg0: i32) -> (i32, i32) {
    %c0_i32 = arith.constant 0 : i32
    %c0_i32_0 = arith.constant 0 : i32
    return %arg0, %c0_i32 : i32, i32
  }
  func.func @transform_2(%arg0: i32) -> (i32, i32) {
    %c0_i32 = arith.constant 0 : i32
    %c0_i32_0 = arith.constant 0 : i32
    %c0_i32_1 = arith.constant 0 : i32
    return %c0_i32, %c0_i32_0 : i32, i32
  }
  func.func @transform_3(%arg0: i32) -> (i32, i32) {
    %c0_i32 = arith.constant 0 : i32
    %c0_i32_0 = arith.constant 0 : i32
    %c0_i32_1 = arith.constant 0 : i32
    return %c0_i32, %c0_i32_0 : i32, i32
  }
  func.func @transform_4(%arg0: i32) -> (i32, i32) {
    %c0_i32 = arith.constant 0 : i32
    %c0_i32_0 = arith.constant 0 : i32
    %c0_i32_1 = arith.constant 0 : i32
    return %c0_i32, %c0_i32_0 : i32, i32
  }
  func.func @transform_5(%arg0: i32) -> (i32, i32) {
    %c0_i32 = arith.constant 0 : i32
    %c0_i32_0 = arith.constant 0 : i32
    %c0_i32_1 = arith.constant 0 : i32
    return %c0_i32, %c0_i32_0 : i32, i32
  }
  func.func @transform_6(%arg0: i32) -> (i32, i32) {
    %c0_i32 = arith.constant 0 : i32
    %c0_i32_0 = arith.constant 0 : i32
    %c0_i32_1 = arith.constant 0 : i32
    return %c0_i32, %c0_i32_0 : i32, i32
  }
  func.func @transform_7(%arg0: i32) -> (i32, i32) {
    %c0_i32 = arith.constant 0 : i32
    %c0_i32_0 = arith.constant 0 : i32
    %c0_i32_1 = arith.constant 0 : i32
    return %c0_i32, %c0_i32_0 : i32, i32
  }
  func.func @transform_8(%arg0: i32) -> (i32, i32) {
    %c0_i32 = arith.constant 0 : i32
    %c0_i32_0 = arith.constant 0 : i32
    %c0_i32_1 = arith.constant 0 : i32
    return %c0_i32, %c0_i32_0 : i32, i32
  }
  func.func @transform_9(%arg0: i32) -> (i32, i32) {
    %c0_i32 = arith.constant 0 : i32
    %c0_i32_0 = arith.constant 0 : i32
    %c0_i32_1 = arith.constant 0 : i32
    return %c0_i32, %c0_i32_0 : i32, i32
  }
  func.func @transform_10(%arg0: i32) -> (i32, i32) {
    %c0_i32 = arith.constant 0 : i32
    %c0_i32_0 = arith.constant 0 : i32
    %c0_i32_1 = arith.constant 0 : i32
    return %c0_i32, %c0_i32_0 : i32, i32
  }
  func.func @transform_11(%arg0: i32) -> (i32, i32) {
    %c0_i32 = arith.constant 0 : i32
    %c0_i32_0 = arith.constant 0 : i32
    %c0_i32_1 = arith.constant 0 : i32
    return %c0_i32, %c0_i32_0 : i32, i32
  }
  func.func @transform_12(%arg0: i32) -> (i32, i32) {
    %c0_i32 = arith.constant 0 : i32
    %c0_i32_0 = arith.constant 0 : i32
    %c0_i32_1 = arith.constant 0 : i32
    return %c0_i32, %c0_i32_0 : i32, i32
  }
  func.func @transform_13(%arg0: i32) -> (i32, i32) {
    %c0_i32 = arith.constant 0 : i32
    %c0_i32_0 = arith.constant 0 : i32
    return %arg0, %c0_i32 : i32, i32
  }
}

</mosaic_0001>

<bundles_post_ra>
// kernel: tpu_custom_call.1
= control target key start
LH: loop header
LB: loop body
LE: loop exit
PB: predicated region body
PF: predicated region fallthrough
CT: control target
= control target key end

     0   :  { %18 = vsyncpa [#allocation3], 0  ;;  %s5987_s0 = inlined_call_operand.hbm [shape: f32[8,272], index: 0, kind: input, shape index: {}]   ;;  %s5988_s1 = inlined_call_operand.hbm [shape: f32[8,48], index: 1, kind: input, shape index: {}]   ;;  %s5989_s2 = inlined_call_operand.hbm [shape: bf16[272,512], index: 2, kind: input, shape index: {}]   ;;  %s5990_s3 = inlined_call_operand.hbm [shape: bf16[48,512], index: 3, kind: input, shape index: {}]   ;;  %s5991_s4 = inlined_call_operand.vmem [shape: f32[1,512], index: 4, kind: input, shape index: {}]   ;;  %s5992_s5 = inlined_call_operand.hbm [shape: bf16[512,512], index: 5, kind: input, shape index: {}]   ;;  %s5993_s6 = inlined_call_operand.vmem [shape: f32[1,512], index: 6, kind: input, shape index: {}]   ;;  %s5994_s7 = inlined_call_operand.hbm [shape: bf16[512,512], index: 7, kind: input, shape index: {}]   ;;  %s5995_s8 = inlined_call_operand.vmem [shape: f32[1,512], index: 8, kind: input, shape index: {}]   ;;  %s5996_s9 = inlined_call_operand.hbm [shape: bf16[512,512], index: 9, kind: input, shape index: {}]   ;;  %s5997_s10 = inlined_call_operand.vmem [shape: f32[1,512], index: 10, kind: input, shape index: {}]   ;;  %s5998_s11 = inlined_call_operand.hbm [shape: bf16[512,128], index: 11, kind: input, shape index: {}]   ;;  %s5999_s12 = inlined_call_operand.vmem [shape: f32[1,128], index: 12, kind: input, shape index: {}]   ;;  %s6000_s13 = inlined_call_operand.hbm [shape: f32[8,128], index: 13, kind: output, shape index: {}]  }
   0x1   :  { %19 = vsyncpa [#allocation6], 0 }
   0x2   :  { %20 = vsyncpa [#allocation9], 0 }
   0x3   :  { %21 = vsyncpa [#allocation12], 0 }
   0x4   :  { %22 = vsyncpa [#allocation15], 0 }
   0x5   :  { %23 = vsyncpa [#allocation4], 0  ;;  %s5710_s25 = smov [#allocation5]   ;;  %s5500_s29 = scalar_lea.hbm %s5988_s1, 128 }
   0x6   :  { %s40_s26 = sshll.u32 %s5710_s25, 4  ;;  %p5501_p0 = scmp.ne.s32.totalorder %s5988_s1, %s5500_s29  ;;  %s41_s26 = int_to_ptr.vmem [resolvable:$true] %s40_s26 }
   0x7   :  { %p5504_p1 = scmp.lt.u32.totalorder %s5500_s29, %s5988_s1 }
   0x9   :  { %p5506_p2 = pnand %p5504_p1, %p5501_p0 }
   0xb   :  { %5509 = shalt.err (!%p5506_p2)
}
   0xc   :  { %s5510_s17 = scalar_lea.vmem %s41_s26, 128  ;;  %p5515_p4 = scmp.lt.s32.totalorder %s41_s26, %s41_s26 }
   0xd   :  { %p5511_p3 = scmp.ne.s32.totalorder %s41_s26, %s5510_s17  ;;  %p5516_p5 = scmp.lt.s32.totalorder %s5510_s17, %s5510_s17 }
   0xf   :  { %p5517_p6 = por %p5516_p5, %p5515_p4 }
  0x11   :  { %p5518_p7 = pnand %p5517_p6, %p5511_p3 }
  0x13   :  { %5521 = shalt.err (!%p5518_p7)
}
  0x14   :  { %43 = dma.hbm_to_vmem [thread:$0]  %s5988_s1, 128, %s41_s26, [#allocation6]  }
  0x15   :  { %s5711_s20 = smov [#allocation8]   ;;  %s5712_s22 = smov [#allocation11]  }
  0x16   :  { %s61_s21 = sshll.u32 %s5711_s20, 4  ;;  %s89_s23 = sshll.u32 %s5712_s22, 4  ;;  %s62_s21 = int_to_ptr.vmem [resolvable:$true] %s61_s21  ;;  %s90_s23 = int_to_ptr.vmem [resolvable:$true] %s89_s23 }
  0x17   :  { %s5522_s27 = scalar_lea.hbm %s5990_s3, 1536 }
  0x18   :  { %p5523_p8 = scmp.ne.s32.totalorder %s5990_s3, %s5522_s27  ;;  %p5526_p9 = scmp.lt.u32.totalorder %s5522_s27, %s5990_s3 }
  0x1a   :  { %p5528_p10 = pnand %p5526_p9, %p5523_p8 }
  0x1c   :  { %5531 = shalt.err (!%p5528_p10)
}
  0x1d   :  { %s5532_s1 = scalar_lea.vmem %s62_s21, 1536  ;;  %p5537_p12 = scmp.lt.s32.totalorder %s62_s21, %s62_s21 }
  0x1e   :  { %p5533_p11 = scmp.ne.s32.totalorder %s62_s21, %s5532_s1  ;;  %p5538_p13 = scmp.lt.s32.totalorder %s5532_s1, %s5532_s1 }
  0x20   :  { %p5539_p0 = por %p5538_p13, %p5537_p12 }
  0x22   :  { %p5540_p1 = pnand %p5539_p0, %p5533_p11 }
  0x24   :  { %5543 = shalt.err (!%p5540_p1)
}
  0x25   :  { %s5713_s26 = smov 256   ;;  %s5714_s15 = smov 16  }
  0x26   :  { %67 = dma.hbm_to_vmem [thread:$0]  %s5990_s3, 1536, %s62_s21, [#allocation9], %s5713_s26, %s5713_s26, %s5714_s15  }
  0x27   :  { %s5544_s20 = scalar_lea.hbm %s5994_s7, 16384 }
  0x28   :  { %p5545_p2 = scmp.ne.s32.totalorder %s5994_s7, %s5544_s20  ;;  %p5548_p3 = scmp.lt.u32.totalorder %s5544_s20, %s5994_s7 }
  0x2a   :  { %p5550_p4 = pnand %p5548_p3, %p5545_p2 }
  0x2c   :  { %5553 = shalt.err (!%p5550_p4)
}
  0x2d   :  { %s5554_s28 = scalar_lea.vmem %s90_s23, 16384  ;;  %p5559_p6 = scmp.lt.s32.totalorder %s90_s23, %s90_s23 }
  0x2e   :  { %p5555_p5 = scmp.ne.s32.totalorder %s90_s23, %s5554_s28  ;;  %p5560_p7 = scmp.lt.s32.totalorder %s5554_s28, %s5554_s28 }
  0x30   :  { %p5561_p8 = por %p5560_p7, %p5559_p6 }
  0x32   :  { %p5562_p9 = pnand %p5561_p8, %p5555_p5 }
  0x34   :  { %5565 = shalt.err (!%p5562_p9)
}
  0x35   :  { %95 = dma.hbm_to_vmem [thread:$0]  %s5994_s7, 16384, %s90_s23, [#allocation12], %s5713_s26, %s5713_s26, %s5714_s15  }
  0x36   :  { %s5715_s29 = smov [#allocation2]   ;;  %s5716_s14 = smov [#allocation7]  }
  0x37   :  { %s30_s30 = sshll.u32 %s5715_s29, 4  ;;  %s49_s1 = sshll.u32 %s5716_s14, 4  ;;  %s31_s30 = int_to_ptr.vmem [resolvable:$true] %s30_s30  ;;  %s50_s1 = int_to_ptr.vmem [resolvable:$true] %s49_s1 }
  0x38   :  { %s5566_s18 = scalar_lea.hbm %s5987_s0, 384 }
  0x39   :  { %p5567_p10 = scmp.ne.s32.totalorder %s5987_s0, %s5566_s18  ;;  %p5570_p11 = scmp.lt.u32.totalorder %s5566_s18, %s5987_s0 }
  0x3b   :  { %p5572_p12 = pnand %p5570_p11, %p5567_p10 }
  0x3d   :  { %5575 = shalt.err (!%p5572_p12)
}
  0x3e   :  { %s5576_s7 = scalar_lea.vmem %s31_s30, 384  ;;  %p5581_p0 = scmp.lt.s32.totalorder %s31_s30, %s31_s30 }
  0x3f   :  { %p5577_p13 = scmp.ne.s32.totalorder %s31_s30, %s5576_s7  ;;  %p5582_p1 = scmp.lt.s32.totalorder %s5576_s7, %s5576_s7 }
  0x41   :  { %p5583_p2 = por %p5582_p1, %p5581_p0 }
  0x43   :  { %p5584_p3 = pnand %p5583_p2, %p5577_p13 }
  0x45   :  { %5587 = shalt.err (!%p5584_p3)
}
  0x46   :  { %33 = dma.hbm_to_vmem [thread:$0]  %s5987_s0, 384, %s31_s30, [#allocation3]  }
  0x47   :  { %s5588_s3 = scalar_lea.hbm %s5989_s2, 8704 }
  0x48   :  { %p5589_p4 = scmp.ne.s32.totalorder %s5989_s2, %s5588_s3  ;;  %p5592_p5 = scmp.lt.u32.totalorder %s5588_s3, %s5989_s2 }
  0x4a   :  { %p5594_p6 = pnand %p5592_p5, %p5589_p4 }
  0x4c   :  { %5597 = shalt.err (!%p5594_p6)
}
  0x4d   :  { %s5598_s17 = scalar_lea.vmem %s50_s1, 8704  ;;  %p5603_p8 = scmp.lt.s32.totalorder %s50_s1, %s50_s1 }
  0x4e   :  { %p5599_p7 = scmp.ne.s32.totalorder %s50_s1, %s5598_s17  ;;  %p5604_p9 = scmp.lt.s32.totalorder %s5598_s17, %s5598_s17 }
  0x50   :  { %p5605_p10 = por %p5604_p9, %p5603_p8 }
  0x52   :  { %p5606_p11 = pnand %p5605_p10, %p5599_p7 }
  0x54   :  { %5609 = shalt.err (!%p5606_p11)
}
  0x55   :  { %55 = dma.hbm_to_vmem [thread:$0]  %s5989_s2, 8704, %s50_s1, [#allocation6], %s5713_s26, %s5713_s26, %s5714_s15  }
  0x56   :  { %s5717_s18 = smov [#allocation10]   ;;  %s5718_s20 = smov [#allocation13]  }
  0x57   :  { %s75_s19 = sshll.u32 %s5717_s18, 4  ;;  %s103_s22 = sshll.u32 %s5718_s20, 4  ;;  %s76_s19 = int_to_ptr.vmem [resolvable:$true] %s75_s19  ;;  %s104_s22 = int_to_ptr.vmem [resolvable:$true] %s103_s22 }
  0x58   :  { %s5610_s23 = scalar_lea.hbm %s5992_s5, 16384 }
  0x59   :  { %p5611_p12 = scmp.ne.s32.totalorder %s5992_s5, %s5610_s23  ;;  %p5614_p13 = scmp.lt.u32.totalorder %s5610_s23, %s5992_s5 }
  0x5b   :  { %p5616_p0 = pnand %p5614_p13, %p5611_p12 }
  0x5d   :  { %5619 = shalt.err (!%p5616_p0)
}
  0x5e   :  { %s5620_s2 = scalar_lea.vmem %s76_s19, 16384  ;;  %p5625_p2 = scmp.lt.s32.totalorder %s76_s19, %s76_s19 }
  0x5f   :  { %p5621_p1 = scmp.ne.s32.totalorder %s76_s19, %s5620_s2  ;;  %p5626_p3 = scmp.lt.s32.totalorder %s5620_s2, %s5620_s2 }
  0x61   :  { %p5627_p4 = por %p5626_p3, %p5625_p2 }
  0x63   :  { %p5628_p5 = pnand %p5627_p4, %p5621_p1 }
  0x65   :  { %5631 = shalt.err (!%p5628_p5)
}
  0x66   :  { %81 = dma.hbm_to_vmem [thread:$0]  %s5992_s5, 16384, %s76_s19, [#allocation9], %s5713_s26, %s5713_s26, %s5714_s15  }
  0x67   :  { %s5632_s16 = scalar_lea.hbm %s5996_s9, 16384 }
  0x68   :  { %p5633_p6 = scmp.ne.s32.totalorder %s5996_s9, %s5632_s16  ;;  %p5636_p7 = scmp.lt.u32.totalorder %s5632_s16, %s5996_s9 }
  0x6a   :  { %p5638_p8 = pnand %p5636_p7, %p5633_p6 }
  0x6c   :  { %5641 = shalt.err (!%p5638_p8)
}
  0x6d   :  { %s5642_s20 = scalar_lea.vmem %s104_s22, 16384  ;;  %p5647_p10 = scmp.lt.s32.totalorder %s104_s22, %s104_s22 }
  0x6e   :  { %p5643_p9 = scmp.ne.s32.totalorder %s104_s22, %s5642_s20  ;;  %p5648_p11 = scmp.lt.s32.totalorder %s5642_s20, %s5642_s20 }
  0x70   :  { %p5649_p12 = por %p5648_p11, %p5647_p10 }
  0x72   :  { %p5650_p13 = pnand %p5649_p12, %p5643_p9 }
  0x74   :  { %5653 = shalt.err (!%p5650_p13)
}
  0x75   :  { %109 = dma.hbm_to_vmem [thread:$0]  %s5996_s9, 16384, %s104_s22, [#allocation12], %s5713_s26, %s5713_s26, %s5714_s15  }
  0x76   :  { %s5719_s24 = smov [#allocation14]   ;;  %s5654_s27 = scalar_lea.hbm %s5998_s11, 4096 }
  0x77   :  { %s117_s7 = sshll.u32 %s5719_s24, 4  ;;  %p5655_p0 = scmp.ne.s32.totalorder %s5998_s11, %s5654_s27  ;;  %s118_s7 = int_to_ptr.vmem [resolvable:$true] %s117_s7 }
  0x78   :  { %p5658_p1 = scmp.lt.u32.totalorder %s5654_s27, %s5998_s11 }
  0x7a   :  { %p5660_p2 = pnand %p5658_p1, %p5655_p0 }
  0x7c   :  { %5663 = shalt.err (!%p5660_p2)
}
  0x7d   :  { %s5664_s21 = scalar_lea.vmem %s118_s7, 4096  ;;  %p5669_p4 = scmp.lt.s32.totalorder %s118_s7, %s118_s7 }
  0x7e   :  { %p5665_p3 = scmp.ne.s32.totalorder %s118_s7, %s5664_s21  ;;  %p5670_p5 = scmp.lt.s32.totalorder %s5664_s21, %s5664_s21 }
  0x80   :  { %p5671_p6 = por %p5670_p5, %p5669_p4 }
  0x82   :  { %p5672_p7 = pnand %p5671_p6, %p5665_p3 }
  0x84   :  { %5675 = shalt.err (!%p5672_p7)
}
  0x85   :  { %s5720_s9 = smov 64   ;;  %s5721_s26 = smov 4  }
  0x86   :  { %123 = dma.hbm_to_vmem [thread:$0]  %s5998_s11, 4096, %s118_s7, [#allocation15], %s5720_s9, %s5720_s9, %s5721_s26  }
  0x87   :  { %5698 = dma.done.wait [#allocation3], 384  }
  0x88   :  { %5699 = vsyncadd [#allocation3], 4294966912 }
  0x89   :  { %5700 = dma.done.wait [#allocation6], 8832  }
  0x8a   :  { %5701 = vsyncadd [#allocation6], 4294958464 }
  0x8b   :  { %5702 = dma.done.wait [#allocation9], 17920  }
  0x8c   :  { %5703 = vsyncadd [#allocation9], 4294949376 }
  0x8d   :  { %5704 = dma.done.wait [#allocation12], 32768  }
  0x8e   :  { %5705 = vsyncadd [#allocation12], 4294934528 }
  0x8f   :  { %5706 = dma.done.wait [#allocation15], 4096  }
  0x90   :  { %5707 = vsyncadd [#allocation15], 4294963200  ;;  %v5722_v0 = vmov 0   ;;  %v4772_v1 = vld [vmem:[#allocation8 + $0x4] ss:$16 sps:$4 sm:$0xff]   ;;  %v225_v13 = vld [vmem:[#allocation5] sm:$0xff] }
  0x91   :  { %335 = vmatprep.mubr.bf16.mxu0 %v5722_v0  ;;  %376 = vmatprep.mubr.bf16.mxu1 %v5722_v0  ;;  %v4774_v2 = vld [vmem:[#allocation8 + $0xc] ss:$16 sps:$4 sm:$0xff]   ;;  %v4776_v3 = vld [vmem:[#allocation8] ss:$16 sps:$4 sm:$0xff]   ;;  %v4777_v4 = vld [vmem:[#allocation8 + $0x8] ss:$16 sps:$4 sm:$0xff]   ;;  %v226_v16 = vpack.c.bf16 %v225_v13, %v225_v13 }
  0x92   :  { %303 = vmatprep.subr.bf16.mxu0 %v4772_v1  ;;  %344 = vmatprep.subr.bf16.mxu1 %v4774_v2  ;;  %v4778_v5 = vld [vmem:[#allocation8 + $0x24] ss:$16 sps:$4 sm:$0xff]   ;;  %v4780_v6 = vld [vmem:[#allocation8 + $0x2c] ss:$16 sps:$4 sm:$0xff]   ;;  %v4782_v7 = vld [vmem:[#allocation8 + $0x20] ss:$16 sps:$4 sm:$0xff]  }
  0x93   :  { %304 = vmatpush1.bf16.msra.mxu0 %v4776_v3  ;;  %345 = vmatpush1.bf16.msra.mxu1 %v4777_v4  ;;  %v4783_v8 = vld [vmem:[#allocation8 + $0x28] ss:$16 sps:$4 sm:$0xff]   ;;  %v4784_v9 = vld [vmem:[#allocation8 + $0x44] ss:$16 sps:$4 sm:$0xff]   ;;  %v4786_v10 = vld [vmem:[#allocation8 + $0x4c] ss:$16 sps:$4 sm:$0xff]  }
  0x94   :  { %305 = vmatprep.subr.bf16.mxu0 %v4778_v5  ;;  %346 = vmatprep.subr.bf16.mxu1 %v4780_v6  ;;  %v4788_v11 = vld [vmem:[#allocation8 + $0x40] ss:$16 sps:$4 sm:$0xff]   ;;  %v4789_v12 = vld [vmem:[#allocation8 + $0x48] ss:$16 sps:$4 sm:$0xff]   ;;  %v4792_v14 = vld [vmem:[#allocation7 + $0x4] ss:$16 sps:$4 sm:$0xff]  }
  0x95   :  { %v4795_v15 = vld [vmem:[#allocation7 + $0x204] ss:$16 sps:$4 sm:$0xff]   ;;  %v4790_v17 = vld [vmem:[#allocation7] ss:$16 sps:$4 sm:$0xff]   ;;  %vm299_vm0 = vcmask 392192   ;;  %vm725_vm1 = vcmask 130048  }
  0x96   :  { %v4793_v18 = vld [vmem:[#allocation7 + $0x200] ss:$16 sps:$4 sm:$0xff]   ;;  %v4798_v19 = vld [vmem:[#allocation7 + $0x24] ss:$16 sps:$4 sm:$0xff]   ;;  %v4801_v20 = vld [vmem:[#allocation7 + $0xc] ss:$16 sps:$4 sm:$0xff]  }
  0x97   :  { %306 = vmatpush1.bf16.msra.mxu0 %v4782_v7  ;;  %347 = vmatpush1.bf16.msra.mxu1 %v4783_v8  ;;  %v4796_v21 = vld [vmem:[#allocation7 + $0x20] ss:$16 sps:$4 sm:$0xff]   ;;  %v4804_v23 = vld [vmem:[#allocation7 + $0x44] ss:$16 sps:$4 sm:$0xff]   ;;  %v4799_v25 = vld [vmem:[#allocation7 + $0x8] ss:$16 sps:$4 sm:$0xff]  }
  0x98   :  { %307 = vmatprep.subr.bf16.mxu0 %v4784_v9  ;;  %348 = vmatprep.subr.bf16.mxu1 %v4786_v10  ;;  %v153_v22 = vld [vmem:[#allocation2 + $0x10] sm:$0xff]  ;;  %v4807_v27 = vld [vmem:[#allocation7 + $0x2c] ss:$16 sps:$4 sm:$0xff]   ;;  %v4805_v29 = vld [vmem:[#allocation7 + $0x28] ss:$16 sps:$4 sm:$0xff]   ;;  %s5723_s30 = smov [#allocation16]  }
  0x99   :  { %v5908_v24 = vpack.c.bf16 %v153_v22, %v153_v22  ;;  %v4802_v26 = vld [vmem:[#allocation7 + $0x40] ss:$16 sps:$4 sm:$0xff]   ;;  %v4810_v28 = vld [vmem:[#allocation7 + $0x64] ss:$16 sps:$4 sm:$0xff]   ;;  %v4813_v31 = vld [vmem:[#allocation7 + $0x4c] ss:$16 sps:$4 sm:$0xff]  }
  0x9a   :  { %v4808_v30 = vld [vmem:[#allocation7 + $0x60] ss:$16 sps:$4 sm:$0xff]   ;;  %v4816_v32 = vld [vmem:[#allocation7 + $0x84] ss:$16 sps:$4 sm:$0xff]   ;;  %v4811_v33 = vld [vmem:[#allocation7 + $0x48] ss:$16 sps:$4 sm:$0xff]  }
  0x9b   :  { %308 = vmatpush1.bf16.msra.mxu0 %v4788_v11  ;;  %349 = vmatpush1.bf16.msra.mxu1 %v4789_v12  ;;  %v4814_v34 = vld [vmem:[#allocation7 + $0x80] ss:$16 sps:$4 sm:$0xff]   ;;  %v4819_v35 = vld [vmem:[#allocation7 + $0x6c] ss:$16 sps:$4 sm:$0xff]   ;;  %v4822_v36 = vld [vmem:[#allocation7 + $0xa4] ss:$16 sps:$4 sm:$0xff]  }
  0x9c   :  { %729 = vmatprep.subr.bf16.mxu0 %v4792_v14  ;;  %770 = vmatprep.subr.bf16.mxu1 %v4795_v15  ;;  %v4817_v37 = vld [vmem:[#allocation7 + $0x68] ss:$16 sps:$4 sm:$0xff]   ;;  %v4820_v38 = vld [vmem:[#allocation7 + $0xa0] ss:$16 sps:$4 sm:$0xff]   ;;  %v4825_v39 = vld [vmem:[#allocation7 + $0x8c] ss:$16 sps:$4 sm:$0xff]  }
  0x9d   :  { %v4828_v40 = vld [vmem:[#allocation7 + $0xc4] ss:$16 sps:$4 sm:$0xff]   ;;  %v4823_v41 = vld [vmem:[#allocation7 + $0x88] ss:$16 sps:$4 sm:$0xff]   ;;  %v4826_v42 = vld [vmem:[#allocation7 + $0xc0] ss:$16 sps:$4 sm:$0xff]  }
  0x9e   :  { %4189 = vmatmul.mubr.msk.bf16.vlgmr.msra.gmra.mrb[0].mxu0 %vm299_vm0, %v226_v16  ;;  %4190 = vmatmul.mubr.msk.bf16.vlgmr.msra.gmra.mrb[0].mxu1 %vm299_vm0, %v226_v16  ;;  %v4831_v43 = vld [vmem:[#allocation7 + $0xac] ss:$16 sps:$4 sm:$0xff]   ;;  %v4834_v44 = vld [vmem:[#allocation7 + $0xe4] ss:$16 sps:$4 sm:$0xff]   ;;  %v4829_v45 = vld [vmem:[#allocation7 + $0xa8] ss:$16 sps:$4 sm:$0xff]  }
  0x9f   :  { %730 = vmatpush1.bf16.msra.mxu0 %v4790_v17  ;;  %771 = vmatpush1.bf16.msra.mxu1 %v4793_v18  ;;  %v4832_v46 = vld [vmem:[#allocation7 + $0xe0] ss:$16 sps:$4 sm:$0xff]   ;;  %v4837_v47 = vld [vmem:[#allocation7 + $0xcc] ss:$16 sps:$4 sm:$0xff]   ;;  %v4840_v48 = vld [vmem:[#allocation7 + $0x104] ss:$16 sps:$4 sm:$0xff]  }
  0xa0   :  { %731 = vmatprep.subr.bf16.mxu0 %v4798_v19  ;;  %802 = vmatprep.mubr.bf16.mxu1 %v5722_v0  ;;  %v4835_v49 = vld [vmem:[#allocation7 + $0xc8] ss:$16 sps:$4 sm:$0xff]   ;;  %v4838_v50 = vld [vmem:[#allocation7 + $0x100] ss:$16 sps:$4 sm:$0xff]   ;;  %v4843_v51 = vld [vmem:[#allocation7 + $0xec] ss:$16 sps:$4 sm:$0xff]  }
  0xa1   :  { %811 = vmatprep.subr.bf16.mxu1 %v4801_v20  ;;  %v4846_v52 = vld [vmem:[#allocation7 + $0x124] ss:$16 sps:$4 sm:$0xff]   ;;  %v4841_v53 = vld [vmem:[#allocation7 + $0xe8] ss:$16 sps:$4 sm:$0xff]   ;;  %v4844_v54 = vld [vmem:[#allocation7 + $0x120] ss:$16 sps:$4 sm:$0xff]  }
  0xa2   :  { %v4849_v55 = vld [vmem:[#allocation7 + $0x10c] ss:$16 sps:$4 sm:$0xff]   ;;  %v4852_v56 = vld [vmem:[#allocation7 + $0x144] ss:$16 sps:$4 sm:$0xff]   ;;  %v4847_v58 = vld [vmem:[#allocation7 + $0x108] ss:$16 sps:$4 sm:$0xff]  }
  0xa3   :  { %732 = vmatpush1.bf16.msra.mxu0 %v4796_v21  ;;  %v152_v57 = vld [vmem:[#allocation2 + $0x8] sm:$0xff]  ;;  %v4850_v59 = vld [vmem:[#allocation7 + $0x140] ss:$16 sps:$4 sm:$0xff]   ;;  %v4858_v62 = vld [vmem:[#allocation7 + $0x164] ss:$16 sps:$4 sm:$0xff]   ;;  %s4164_s18 = sshll.u32 %s5723_s30, 4  ;;  %s4165_s18 = int_to_ptr.vmem [resolvable:$true] %s4164_s18 }
  0xa4   :  { %733 = vmatprep.subr.bf16.mxu0 %v4804_v23  ;;  %v155_v60 = vpack.c.bf16 %v152_v57, %v152_v57  ;;  %v4855_v61 = vld [vmem:[#allocation7 + $0x12c] ss:$16 sps:$4 sm:$0xff]   ;;  %v4853_v63 = vld [vmem:[#allocation7 + $0x128] ss:$16 sps:$4 sm:$0xff]   ;;  %v4856_v1 = vld [vmem:[#allocation7 + $0x160] ss:$16 sps:$4 sm:$0xff]   ;;  %p5681_p9 = scmp.lt.s32.totalorder %s4165_s18, %s4165_s18 }
  0xa5   :  { %v4861_v2 = vld [vmem:[#allocation7 + $0x14c] ss:$16 sps:$4 sm:$0xff]   ;;  %v4864_v3 = vld [vmem:[#allocation7 + $0x184] ss:$16 sps:$4 sm:$0xff]   ;;  %v4859_v4 = vld [vmem:[#allocation7 + $0x148] ss:$16 sps:$4 sm:$0xff]  }
  0xa6   :  { %4259 = vmatmul.mubr.msk.bf16.vlgmr.msra.gmra.mrb[4].mxu1 %vm725_vm1, %v5908_v24  ;;  %761 = vmatprep.mubr.bf16.mxu0 %v155_v60  ;;  %v4862_v5 = vld [vmem:[#allocation7 + $0x180] ss:$16 sps:$4 sm:$0xff]   ;;  %v4867_v6 = vld [vmem:[#allocation7 + $0x16c] ss:$16 sps:$4 sm:$0xff]   ;;  %v4870_v7 = vld [vmem:[#allocation7 + $0x1a4] ss:$16 sps:$4 sm:$0xff]  }
  0xa7   :  { %812 = vmatpush1.bf16.msra.mxu1 %v4799_v25  ;;  %734 = vmatpush1.bf16.msra.mxu0 %v4802_v26  ;;  %v4865_v8 = vld [vmem:[#allocation7 + $0x168] ss:$16 sps:$4 sm:$0xff]   ;;  %v4868_v9 = vld [vmem:[#allocation7 + $0x1a0] ss:$16 sps:$4 sm:$0xff]   ;;  %v4873_v10 = vld [vmem:[#allocation7 + $0x18c] ss:$16 sps:$4 sm:$0xff]  }
  0xa8   :  { %813 = vmatprep.subr.bf16.mxu1 %v4807_v27  ;;  %735 = vmatprep.subr.bf16.mxu0 %v4810_v28  ;;  %v4876_v11 = vld [vmem:[#allocation7 + $0x1c4] ss:$16 sps:$4 sm:$0xff]   ;;  %v4871_v12 = vld [vmem:[#allocation7 + $0x188] ss:$16 sps:$4 sm:$0xff]   ;;  %v4874_v13 = vld [vmem:[#allocation7 + $0x1c0] ss:$16 sps:$4 sm:$0xff]  }
  0xa9   :  { %843 = vmatprep.mubr.bf16.mxu1 %v155_v60  ;;  %v4879_v14 = vld [vmem:[#allocation7 + $0x1ac] ss:$16 sps:$4 sm:$0xff]   ;;  %v4882_v15 = vld [vmem:[#allocation7 + $0x1e4] ss:$16 sps:$4 sm:$0xff]   ;;  %v4877_v16 = vld [vmem:[#allocation7 + $0x1a8] ss:$16 sps:$4 sm:$0xff]  }
  0xaa   :  { %v4880_v17 = vld [vmem:[#allocation7 + $0x1e0] ss:$16 sps:$4 sm:$0xff]   ;;  %v4885_v19 = vld [vmem:[#allocation7 + $0x1cc] ss:$16 sps:$4 sm:$0xff]   ;;  %v4883_v21 = vld [vmem:[#allocation7 + $0x1c8] ss:$16 sps:$4 sm:$0xff]  }
  0xab   :  { %814 = vmatpush1.bf16.msra.mxu1 %v4805_v29  ;;  %736 = vmatpush1.bf16.msra.mxu0 %v4808_v30  ;;  %v151_v18 = vld [vmem:[#allocation2] sm:$0xff]  ;;  %v4891_v20 = vld [vmem:[#allocation7 + $0x20c] ss:$16 sps:$4 sm:$0xff]   ;;  %v4889_v22 = vld [vmem:[#allocation7 + $0x208] ss:$16 sps:$4 sm:$0xff]   ;;  %s5676_s20 = scalar_lea.vmem %s4165_s18, 128 }
  0xac   :  { %815 = vmatprep.subr.bf16.mxu1 %v4813_v31  ;;  %737 = vmatprep.subr.bf16.mxu0 %v4816_v32  ;;  %v154_v23 = vpack.c.bf16 %v151_v18, %v151_v18  ;;  %v4888_v25 = vld [vmem:[#allocation7 + $0x1ec] ss:$16 sps:$4 sm:$0xff]   ;;  %v4886_v26 = vld [vmem:[#allocation7 + $0x1e8] ss:$16 sps:$4 sm:$0xff]   ;;  %v4892_v27 = vld [vmem:[#allocation10] ss:$16 sps:$4 sm:$0xff]   ;;  %p5677_p8 = scmp.ne.s32.totalorder %s4165_s18, %s5676_s20  ;;  %p5682_p10 = scmp.lt.s32.totalorder %s5676_s20, %s5676_s20 }
  0xad   :  { %v4894_v28 = vld [vmem:[#allocation10 + $0x4] ss:$16 sps:$4 sm:$0xff]   ;;  %v4895_v29 = vld [vmem:[#allocation10 + $0x8] ss:$16 sps:$4 sm:$0xff]   ;;  %v4897_v30 = vld [vmem:[#allocation10 + $0xc] ss:$16 sps:$4 sm:$0xff]  }
  0xae   :  { %v4900_v31 = vld [vmem:[#allocation10 + $0x24] ss:$16 sps:$4 sm:$0xff]   ;;  %v4903_v32 = vld [vmem:[#allocation10 + $0x2c] ss:$16 sps:$4 sm:$0xff]   ;;  %v4943_v60 = vld [vmem:[#allocation10 + $0x108] ss:$16 sps:$4 sm:$0xff]   ;;  %p5683_p11 = por %p5682_p10, %p5681_p9 }
  0xaf   :  { %816 = vmatpush1.bf16.msra.mxu1 %v4811_v33  ;;  %738 = vmatpush1.bf16.msra.mxu0 %v4814_v34  ;;  %v4898_v33 = vld [vmem:[#allocation10 + $0x20] ss:$16 sps:$4 sm:$0xff]   ;;  %v4901_v34 = vld [vmem:[#allocation10 + $0x28] ss:$16 sps:$4 sm:$0xff]   ;;  %v4942_v57 = vld [vmem:[#allocation10 + $0x104] ss:$16 sps:$4 sm:$0xff]  }
  0xb0   :  { %817 = vmatprep.subr.bf16.mxu1 %v4819_v35  ;;  %739 = vmatprep.subr.bf16.mxu0 %v4822_v36  ;;  %v4906_v35 = vld [vmem:[#allocation10 + $0x44] ss:$16 sps:$4 sm:$0xff]   ;;  %v4904_v36 = vld [vmem:[#allocation10 + $0x40] ss:$16 sps:$4 sm:$0xff]   ;;  %p5684_p12 = pnand %p5683_p11, %p5677_p8 }
  0xb1   :  { %v4978_v18 = vld [vmem:[#allocation10 + $0x1c4] ss:$16 sps:$4 sm:$0xff]  }
  0xb3   :  { %818 = vmatpush1.bf16.msra.mxu1 %v4817_v37  ;;  %740 = vmatpush1.bf16.msra.mxu0 %v4820_v38  ;;  %v4912_v37 = vld [vmem:[#allocation10 + $0x64] ss:$16 sps:$4 sm:$0xff]   ;;  %v4915_v38 = vld [vmem:[#allocation10 + $0x6c] ss:$16 sps:$4 sm:$0xff]  }
  0xb4   :  { %819 = vmatprep.subr.bf16.mxu1 %v4825_v39  ;;  %741 = vmatprep.subr.bf16.mxu0 %v4828_v40  ;;  %v4910_v39 = vld [vmem:[#allocation10 + $0x60] ss:$16 sps:$4 sm:$0xff]   ;;  %v4913_v40 = vld [vmem:[#allocation10 + $0x68] ss:$16 sps:$4 sm:$0xff]  }
  0xb7   :  { %820 = vmatpush1.bf16.msra.mxu1 %v4823_v41  ;;  %742 = vmatpush1.bf16.msra.mxu0 %v4826_v42  ;;  %v4918_v41 = vld [vmem:[#allocation10 + $0x84] ss:$16 sps:$4 sm:$0xff]   ;;  %v4921_v42 = vld [vmem:[#allocation10 + $0x8c] ss:$16 sps:$4 sm:$0xff]  }
  0xb8   :  { %821 = vmatprep.subr.bf16.mxu1 %v4831_v43  ;;  %743 = vmatprep.subr.bf16.mxu0 %v4834_v44  ;;  %v4916_v43 = vld [vmem:[#allocation10 + $0x80] ss:$16 sps:$4 sm:$0xff]   ;;  %v4919_v44 = vld [vmem:[#allocation10 + $0x88] ss:$16 sps:$4 sm:$0xff]  }
  0xbb   :  { %822 = vmatpush1.bf16.msra.mxu1 %v4829_v45  ;;  %744 = vmatpush1.bf16.msra.mxu0 %v4832_v46  ;;  %v4924_v45 = vld [vmem:[#allocation10 + $0xa4] ss:$16 sps:$4 sm:$0xff]   ;;  %v4922_v46 = vld [vmem:[#allocation10 + $0xa0] ss:$16 sps:$4 sm:$0xff]  }
  0xbc   :  { %823 = vmatprep.subr.bf16.mxu1 %v4837_v47  ;;  %745 = vmatprep.subr.bf16.mxu0 %v4840_v48  ;;  %v4927_v47 = vld [vmem:[#allocation10 + $0xac] ss:$16 sps:$4 sm:$0xff]   ;;  %v4925_v48 = vld [vmem:[#allocation10 + $0xa8] ss:$16 sps:$4 sm:$0xff]  }
  0xbf   :  { %824 = vmatpush1.bf16.msra.mxu1 %v4835_v49  ;;  %746 = vmatpush1.bf16.msra.mxu0 %v4838_v50  ;;  %v4930_v49 = vld [vmem:[#allocation10 + $0xc4] ss:$16 sps:$4 sm:$0xff]   ;;  %v4933_v50 = vld [vmem:[#allocation10 + $0xcc] ss:$16 sps:$4 sm:$0xff]  }
  0xc0   :  { %825 = vmatprep.subr.bf16.mxu1 %v4843_v51  ;;  %747 = vmatprep.subr.bf16.mxu0 %v4846_v52  ;;  %v4928_v51 = vld [vmem:[#allocation10 + $0xc0] ss:$16 sps:$4 sm:$0xff]   ;;  %v4931_v52 = vld [vmem:[#allocation10 + $0xc8] ss:$16 sps:$4 sm:$0xff]  }
  0xc3   :  { %826 = vmatpush1.bf16.msra.mxu1 %v4841_v53  ;;  %748 = vmatpush1.bf16.msra.mxu0 %v4844_v54  ;;  %v4936_v53 = vld [vmem:[#allocation10 + $0xe4] ss:$16 sps:$4 sm:$0xff]   ;;  %v4939_v54 = vld [vmem:[#allocation10 + $0xec] ss:$16 sps:$4 sm:$0xff]  }
  0xc4   :  { %827 = vmatprep.subr.bf16.mxu1 %v4849_v55  ;;  %749 = vmatprep.subr.bf16.mxu0 %v4852_v56  ;;  %v4934_v55 = vld [vmem:[#allocation10 + $0xe0] ss:$16 sps:$4 sm:$0xff]   ;;  %v4937_v56 = vld [vmem:[#allocation10 + $0xe8] ss:$16 sps:$4 sm:$0xff]  }
  0xc7   :  { %828 = vmatpush1.bf16.msra.mxu1 %v4847_v58  ;;  %750 = vmatpush1.bf16.msra.mxu0 %v4850_v59  ;;  %v4945_v58 = vld [vmem:[#allocation10 + $0x10c] ss:$16 sps:$4 sm:$0xff]   ;;  %v4940_v59 = vld [vmem:[#allocation10 + $0x100] ss:$16 sps:$4 sm:$0xff]  }
  0xc8   :  { %829 = vmatprep.subr.bf16.mxu1 %v4855_v61  ;;  %751 = vmatprep.subr.bf16.mxu0 %v4858_v62  ;;  %v4948_v61 = vld [vmem:[#allocation10 + $0x124] ss:$16 sps:$4 sm:$0xff]   ;;  %v4951_v62 = vld [vmem:[#allocation10 + $0x12c] ss:$16 sps:$4 sm:$0xff]  }
  0xcb   :  { %830 = vmatpush1.bf16.msra.mxu1 %v4853_v63  ;;  %752 = vmatpush1.bf16.msra.mxu0 %v4856_v1  ;;  %v4946_v63 = vld [vmem:[#allocation10 + $0x120] ss:$16 sps:$4 sm:$0xff]   ;;  %v4949_v1 = vld [vmem:[#allocation10 + $0x128] ss:$16 sps:$4 sm:$0xff]  }
  0xcc   :  { %831 = vmatprep.subr.bf16.mxu1 %v4861_v2  ;;  %753 = vmatprep.subr.bf16.mxu0 %v4864_v3  ;;  %v4954_v2 = vld [vmem:[#allocation10 + $0x144] ss:$16 sps:$4 sm:$0xff]   ;;  %v4957_v3 = vld [vmem:[#allocation10 + $0x14c] ss:$16 sps:$4 sm:$0xff]  }
  0xcf   :  { %832 = vmatpush1.bf16.msra.mxu1 %v4859_v4  ;;  %754 = vmatpush1.bf16.msra.mxu0 %v4862_v5  ;;  %v4952_v4 = vld [vmem:[#allocation10 + $0x140] ss:$16 sps:$4 sm:$0xff]   ;;  %v4955_v5 = vld [vmem:[#allocation10 + $0x148] ss:$16 sps:$4 sm:$0xff]  }
  0xd0   :  { %833 = vmatprep.subr.bf16.mxu1 %v4867_v6  ;;  %755 = vmatprep.subr.bf16.mxu0 %v4870_v7  ;;  %v4960_v6 = vld [vmem:[#allocation10 + $0x164] ss:$16 sps:$4 sm:$0xff]   ;;  %v4963_v7 = vld [vmem:[#allocation10 + $0x16c] ss:$16 sps:$4 sm:$0xff]  }
  0xd3   :  { %834 = vmatpush1.bf16.msra.mxu1 %v4865_v8  ;;  %756 = vmatpush1.bf16.msra.mxu0 %v4868_v9  ;;  %v4958_v8 = vld [vmem:[#allocation10 + $0x160] ss:$16 sps:$4 sm:$0xff]   ;;  %v4961_v9 = vld [vmem:[#allocation10 + $0x168] ss:$16 sps:$4 sm:$0xff]  }
  0xd4   :  { %835 = vmatprep.subr.bf16.mxu1 %v4873_v10  ;;  %757 = vmatprep.subr.bf16.mxu0 %v4876_v11  ;;  %v4966_v10 = vld [vmem:[#allocation10 + $0x184] ss:$16 sps:$4 sm:$0xff]   ;;  %v4969_v11 = vld [vmem:[#allocation10 + $0x18c] ss:$16 sps:$4 sm:$0xff]  }
  0xd7   :  { %836 = vmatpush1.bf16.msra.mxu1 %v4871_v12  ;;  %758 = vmatpush1.bf16.msra.mxu0 %v4874_v13  ;;  %v4964_v12 = vld [vmem:[#allocation10 + $0x180] ss:$16 sps:$4 sm:$0xff]   ;;  %v4967_v13 = vld [vmem:[#allocation10 + $0x188] ss:$16 sps:$4 sm:$0xff]  }
  0xd8   :  { %837 = vmatprep.subr.bf16.mxu1 %v4879_v14  ;;  %759 = vmatprep.subr.bf16.mxu0 %v4882_v15  ;;  %v4972_v14 = vld [vmem:[#allocation10 + $0x1a4] ss:$16 sps:$4 sm:$0xff]   ;;  %v4975_v15 = vld [vmem:[#allocation10 + $0x1ac] ss:$16 sps:$4 sm:$0xff]  }
  0xdb   :  { %838 = vmatpush1.bf16.msra.mxu1 %v4877_v16  ;;  %760 = vmatpush1.bf16.msra.mxu0 %v4880_v17  ;;  %v4970_v16 = vld [vmem:[#allocation10 + $0x1a0] ss:$16 sps:$4 sm:$0xff]   ;;  %v4973_v17 = vld [vmem:[#allocation10 + $0x1a8] ss:$16 sps:$4 sm:$0xff]  }
  0xdc   :  { %839 = vmatprep.subr.bf16.mxu1 %v4885_v19  ;;  %852 = vmatprep.subr.bf16.mxu0 %v4891_v20  ;;  %v4976_v19 = vld [vmem:[#allocation10 + $0x1c0] ss:$16 sps:$4 sm:$0xff]   ;;  %v4979_v20 = vld [vmem:[#allocation10 + $0x1c8] ss:$16 sps:$4 sm:$0xff]  }
  0xde   :  { %762 = vmatmul.mubr.bf16.vlgmr.msra.gmra.mrb[4].mxu0 %v154_v23 }
  0xdf   :  { %840 = vmatpush1.bf16.msra.mxu1 %v4883_v21  ;;  %853 = vmatpush1.bf16.msra.mxu0 %v4889_v22  ;;  %v4981_v21 = vld [vmem:[#allocation10 + $0x1cc] ss:$16 sps:$4 sm:$0xff]   ;;  %v4984_v22 = vld [vmem:[#allocation10 + $0x1e4] ss:$16 sps:$4 sm:$0xff]  }
  0xe0   :  { %841 = vmatprep.subr.bf16.mxu1 %v4888_v25  ;;  %884 = vmatprep.mubr.bf16.mxu0 %v5722_v0  ;;  %v4909_v0 = vld [vmem:[#allocation10 + $0x4c] ss:$16 sps:$4 sm:$0xff]   ;;  %v4982_v25 = vld [vmem:[#allocation10 + $0x1e0] ss:$16 sps:$4 sm:$0xff]  }
  0xe1   :  { %1717 = vmatprep.subr.bf16.mxu0 %v4894_v28  ;;  %v4993_v28 = vld [vmem:[#allocation10 + $0x20c] ss:$16 sps:$4 sm:$0xff]  }
  0xe3   :  { %842 = vmatpush1.bf16.msra.mxu1 %v4886_v26  ;;  %v4985_v26 = vld [vmem:[#allocation10 + $0x1e8] ss:$16 sps:$4 sm:$0xff]  }
  0xe4   :  { %1799 = vmatprep.subr.bf16.mxu1 %v4897_v30 }
  0xe6   :  { %844 = vmatmul.mubr.bf16.vlgmr.msra.gmra.mrb[8].mxu1 %v154_v23  ;;  %4260 = vmatmul.mubr.msk.bf16.vlgmr.msra.gmra.mrb[8].mxu0 %vm725_vm1, %v5908_v24  ;;  %v4907_v24 = vld [vmem:[#allocation10 + $0x48] ss:$16 sps:$4 sm:$0xff]   ;;  %v4987_v23 = vld [vmem:[#allocation10 + $0x1ec] ss:$16 sps:$4 sm:$0xff]  }
  0xe7   :  { %1718 = vmatpush1.bf16.msra.mxu0 %v4892_v27  ;;  %1800 = vmatpush1.bf16.msra.mxu1 %v4895_v29  ;;  %v4990_v27 = vld [vmem:[#allocation10 + $0x204] ss:$16 sps:$4 sm:$0xff]  }
  0xe8   :  { %1719 = vmatprep.subr.bf16.mxu0 %v4900_v31  ;;  %1801 = vmatprep.subr.bf16.mxu1 %v4903_v32 }
  0xeb   :  { %1720 = vmatpush1.bf16.msra.mxu0 %v4898_v33  ;;  %1802 = vmatpush1.bf16.msra.mxu1 %v4901_v34 }
  0xec   :  { %1721 = vmatprep.subr.bf16.mxu0 %v4906_v35  ;;  %1803 = vmatprep.subr.bf16.mxu1 %v4909_v0 }
  0xef   :  { %1722 = vmatpush1.bf16.msra.mxu0 %v4904_v36  ;;  %1804 = vmatpush1.bf16.msra.mxu1 %v4907_v24 }
  0xf0   :  { %1723 = vmatprep.subr.bf16.mxu0 %v4912_v37  ;;  %1805 = vmatprep.subr.bf16.mxu1 %v4915_v38 }
  0xf3   :  { %1724 = vmatpush1.bf16.msra.mxu0 %v4910_v39  ;;  %1806 = vmatpush1.bf16.msra.mxu1 %v4913_v40  ;;  %v895_v39 = vlaneseq }
  0xf4   :  { %1725 = vmatprep.subr.bf16.mxu0 %v4918_v41  ;;  %1807 = vmatprep.subr.bf16.mxu1 %v4921_v42  ;;  %v893_v42 = vld [vmem:[%s5991_s4] sm:$0xf] }
  0xf5   :  { %v896_v40 = vshrl.u32 %v895_v39, 7  ;;  %v5029_v39 = vld [vmem:[#allocation10 + $0x2cc] ss:$16 sps:$4 sm:$0xff]  }
  0xf7   :  { %1726 = vmatpush1.bf16.msra.mxu0 %v4916_v43  ;;  %1808 = vmatpush1.bf16.msra.mxu1 %v4919_v44  ;;  %v5915_v41 = vsub.s32 0, %v896_v40  ;;  %v5920_v43 = vsub.s32 1, %v896_v40 }
  0xf8   :  { %1727 = vmatprep.subr.bf16.mxu0 %v4924_v45  ;;  %1809 = vmatprep.subr.bf16.mxu1 %v4927_v47 }
  0xfb   :  { %1728 = vmatpush1.bf16.msra.mxu0 %v4922_v46  ;;  %1810 = vmatpush1.bf16.msra.mxu1 %v4925_v48  ;;  %v898_v46 = vrot.slane %v893_v42, %v5915_v41 }
  0xfc   :  { %1729 = vmatprep.subr.bf16.mxu0 %v4930_v49  ;;  %1811 = vmatprep.subr.bf16.mxu1 %v4933_v50  ;;  %v902_v49 = vrot.slane %v893_v42, %v5920_v43 }
  0xff   :  { %1730 = vmatpush1.bf16.msra.mxu0 %v4928_v51  ;;  %1812 = vmatpush1.bf16.msra.mxu1 %v4931_v52 }
 0x100   :  { %1731 = vmatprep.subr.bf16.mxu0 %v4936_v53  ;;  %1813 = vmatprep.subr.bf16.mxu1 %v4939_v54 }
 0x103   :  { %1732 = vmatpush1.bf16.msra.mxu0 %v4934_v55  ;;  %1814 = vmatpush1.bf16.msra.mxu1 %v4937_v56  ;;  %v5924_v55 = vsub.s32 2, %v896_v40 }
 0x104   :  { %1733 = vmatprep.subr.bf16.mxu0 %v4942_v57  ;;  %1815 = vmatprep.subr.bf16.mxu1 %v4945_v58  ;;  %v5926_v57 = vsub.s32 3, %v896_v40  ;;  %v5024_v40 = vld [vmem:[#allocation10 + $0x2c0] ss:$16 sps:$4 sm:$0xff]  }
 0x107   :  { %1734 = vmatpush1.bf16.msra.mxu0 %v4940_v59  ;;  %1816 = vmatpush1.bf16.msra.mxu1 %v4943_v60 }
 0x108   :  { %1735 = vmatprep.subr.bf16.mxu0 %v4948_v61  ;;  %1817 = vmatprep.subr.bf16.mxu1 %v4951_v62 }
 0x10b   :  { %1736 = vmatpush1.bf16.msra.mxu0 %v4946_v63  ;;  %1818 = vmatpush1.bf16.msra.mxu1 %v4949_v1  ;;  %v906_v1 = vrot.slane %v893_v42, %v5924_v55 }
 0x10c   :  { %1737 = vmatprep.subr.bf16.mxu0 %v4954_v2  ;;  %1819 = vmatprep.subr.bf16.mxu1 %v4957_v3 }
 0x10f   :  { %1738 = vmatpush1.bf16.msra.mxu0 %v4952_v4  ;;  %1820 = vmatpush1.bf16.msra.mxu1 %v4955_v5  ;;  %v910_v4 = vrot.slane %v893_v42, %v5926_v57  ;;  %v5027_v42 = vld [vmem:[#allocation10 + $0x2c8] ss:$16 sps:$4 sm:$0xff]  }
 0x110   :  { %1739 = vmatprep.subr.bf16.mxu0 %v4960_v6  ;;  %1821 = vmatprep.subr.bf16.mxu1 %v4963_v7  ;;  %v4988_v6 = vld [vmem:[#allocation10 + $0x200] ss:$16 sps:$4 sm:$0xff]   ;;  %v4991_v7 = vld [vmem:[#allocation10 + $0x208] ss:$16 sps:$4 sm:$0xff]  }
 0x113   :  { %1740 = vmatpush1.bf16.msra.mxu0 %v4958_v8  ;;  %1822 = vmatpush1.bf16.msra.mxu1 %v4961_v9 }
 0x114   :  { %1741 = vmatprep.subr.bf16.mxu0 %v4966_v10  ;;  %1823 = vmatprep.subr.bf16.mxu1 %v4969_v11 }
 0x117   :  { %1742 = vmatpush1.bf16.msra.mxu0 %v4964_v12  ;;  %1824 = vmatpush1.bf16.msra.mxu1 %v4967_v13  ;;  %v4996_v12 = vld [vmem:[#allocation10 + $0x224] ss:$16 sps:$4 sm:$0xff]   ;;  %v4999_v13 = vld [vmem:[#allocation10 + $0x22c] ss:$16 sps:$4 sm:$0xff]  }
 0x118   :  { %1743 = vmatprep.subr.bf16.mxu0 %v4972_v14  ;;  %1825 = vmatprep.subr.bf16.mxu1 %v4975_v15 }
 0x11b   :  { %1744 = vmatpush1.bf16.msra.mxu0 %v4970_v16  ;;  %1826 = vmatpush1.bf16.msra.mxu1 %v4973_v17 }
 0x11c   :  { %1745 = vmatprep.subr.bf16.mxu0 %v4978_v18  ;;  %1827 = vmatprep.subr.bf16.mxu1 %v4981_v21  ;;  %v5002_v21 = vld [vmem:[#allocation10 + $0x244] ss:$16 sps:$4 sm:$0xff]  }
 0x11f   :  { %1746 = vmatpush1.bf16.msra.mxu0 %v4976_v19  ;;  %1828 = vmatpush1.bf16.msra.mxu1 %v4979_v20  ;;  %v4994_v19 = vld [vmem:[#allocation10 + $0x220] ss:$16 sps:$4 sm:$0xff]   ;;  %v4997_v20 = vld [vmem:[#allocation10 + $0x228] ss:$16 sps:$4 sm:$0xff]  }
 0x120   :  { %1747 = vmatprep.subr.bf16.mxu0 %v4984_v22  ;;  %1829 = vmatprep.subr.bf16.mxu1 %v4987_v23  ;;  %v5005_v22 = vld [vmem:[#allocation10 + $0x24c] ss:$16 sps:$4 sm:$0xff]  }
 0x123   :  { %1748 = vmatpush1.bf16.msra.mxu0 %v4982_v25  ;;  %1830 = vmatpush1.bf16.msra.mxu1 %v4985_v26  ;;  %v5000_v26 = vld [vmem:[#allocation10 + $0x240] ss:$16 sps:$4 sm:$0xff]  }
 0x124   :  { %1758 = vmatprep.subr.bf16.mxu0 %v4990_v27  ;;  %1840 = vmatprep.subr.bf16.mxu1 %v4993_v28  ;;  %v5003_v27 = vld [vmem:[#allocation10 + $0x248] ss:$16 sps:$4 sm:$0xff]   ;;  %v5008_v28 = vld [vmem:[#allocation10 + $0x264] ss:$16 sps:$4 sm:$0xff]  }
 0x171   :  { %v337_v29 = vpop.f32.mrb[0].mxu0  ;;  %v378_v30 = vpop.f32.mrb[0].mxu1 }
 0x172   :  { %v339_v31 = vpop.f32.mrb[1].mxu0  ;;  %v380_v32 = vpop.f32.mrb[1].mxu1 }
 0x173   :  { %v341_v33 = vpop.f32.mrb[2].mxu0  ;;  %v382_v34 = vpop.f32.mrb[2].mxu1 }
 0x174   :  { %v342_v35 = vpop.f32.mrb[3].mxu0  ;;  %v383_v0 = vpop.f32.mrb[3].mxu1  ;;  %v5017_v33 = vld [vmem:[#allocation10 + $0x28c] ss:$16 sps:$4 sm:$0xff]   ;;  %v5012_v34 = vld [vmem:[#allocation10 + $0x280] ss:$16 sps:$4 sm:$0xff]  }
 0x175   :  { %v5015_v35 = vld [vmem:[#allocation10 + $0x288] ss:$16 sps:$4 sm:$0xff]   ;;  %v5020_v0 = vld [vmem:[#allocation10 + $0x2a4] ss:$16 sps:$4 sm:$0xff]  }
 0x179   :  { %v804_v36 = vpop.f32.mrb[4].mxu1 }
 0x17a   :  { %v806_v24 = vpop.f32.mrb[5].mxu1 }
 0x17b   :  { %v808_v37 = vpop.f32.mrb[6].mxu1 }
 0x17c   :  { %v809_v38 = vpop.f32.mrb[7].mxu1  ;;  %v5021_v37 = vld [vmem:[#allocation10 + $0x2a8] ss:$16 sps:$4 sm:$0xff]  }
 0x17d   :  { %v5026_v38 = vld [vmem:[#allocation10 + $0x2c4] ss:$16 sps:$4 sm:$0xff]  }
 0x1b1   :  { %v763_v44 = vpop.f32.mrb[4].mxu0 }
 0x1b2   :  { %v764_v45 = vadd.f32 %v763_v44, %v337_v29  ;;  %v765_v47 = vpop.f32.mrb[5].mxu0  ;;  %v5011_v29 = vld [vmem:[#allocation10 + $0x26c] ss:$16 sps:$4 sm:$0xff]   ;;  %v5032_v44 = vld [vmem:[#allocation10 + $0x2e4] ss:$16 sps:$4 sm:$0xff]  }
 0x1b3   :  { %v766_v48 = vadd.f32 %v765_v47, %v339_v31  ;;  %v767_v50 = vpop.f32.mrb[6].mxu0  ;;  %v5009_v31 = vld [vmem:[#allocation10 + $0x268] ss:$16 sps:$4 sm:$0xff]  }
 0x1b4   :  { %v805_v51 = vadd.f32 %v804_v36, %v764_v45  ;;  %v768_v52 = vpop.f32.mrb[7].mxu0  ;;  %v5023_v36 = vld [vmem:[#allocation10 + $0x2ac] ss:$16 sps:$4 sm:$0xff]   ;;  %v5033_v47 = vld [vmem:[#allocation10 + $0x2e8] ss:$16 sps:$4 sm:$0xff]  }
 0x1b5   :  { %v807_v53 = vadd.f32 %v806_v24, %v766_v48  ;;  %v5018_v24 = vld [vmem:[#allocation10 + $0x2a0] ss:$16 sps:$4 sm:$0xff]   ;;  %v5035_v45 = vld [vmem:[#allocation10 + $0x2ec] ss:$16 sps:$4 sm:$0xff]   ;;  %v5038_v48 = vld [vmem:[#allocation10 + $0x304] ss:$16 sps:$4 sm:$0xff]  }
 0x1b6   :  { %v915_v54 = vadd.f32 %v898_v46, %v805_v51  ;;  %v5030_v46 = vld [vmem:[#allocation10 + $0x2e0] ss:$16 sps:$4 sm:$0xff]   ;;  %v5039_v51 = vld [vmem:[#allocation10 + $0x308] ss:$16 sps:$4 sm:$0xff]   ;;  %v5044_v52 = vld [vmem:[#allocation10 + $0x324] ss:$16 sps:$4 sm:$0xff]  }
 0x1b7   :  { %v916_v56 = vadd.f32 %v902_v49, %v807_v53  ;;  %v5041_v49 = vld [vmem:[#allocation10 + $0x30c] ss:$16 sps:$4 sm:$0xff]   ;;  %v5036_v50 = vld [vmem:[#allocation10 + $0x300] ss:$16 sps:$4 sm:$0xff]  }
 0x1b8   :  { %v919_v58 = vmax.f32 %v915_v54, 0.0  ;;  %v5047_v53 = vld [vmem:[#allocation10 + $0x32c] ss:$16 sps:$4 sm:$0xff]   ;;  %v5042_v54 = vld [vmem:[#allocation10 + $0x320] ss:$16 sps:$4 sm:$0xff]  }
 0x1b9   :  { %v845_v59 = vpop.f32.mrb[8].mxu1  ;;  %v886_v60 = vpop.f32.mrb[8].mxu0  ;;  %v920_v61 = vmax.f32 %v916_v56, 0.0  ;;  %v5045_v56 = vld [vmem:[#allocation10 + $0x328] ss:$16 sps:$4 sm:$0xff]  }
 0x1ba   :  { %v846_v62 = vadd.f32 %v845_v59, %v378_v30  ;;  %v847_v63 = vpop.f32.mrb[9].mxu1  ;;  %v888_v2 = vpop.f32.mrb[9].mxu0  ;;  %v923_v10 = vpack.c.bf16 %v919_v58, %v919_v58  ;;  %v5006_v30 = vld [vmem:[#allocation10 + $0x260] ss:$16 sps:$4 sm:$0xff]   ;;  %v5050_v58 = vld [vmem:[#allocation10 + $0x344] ss:$16 sps:$4 sm:$0xff]  }
 0x1bb   :  { %v848_v3 = vadd.f32 %v847_v63, %v380_v32  ;;  %v924_v5 = vpack.c.bf16 %v920_v61, %v920_v61  ;;  %v849_v8 = vpop.f32.mrb[10].mxu1  ;;  %v890_v9 = vpop.f32.mrb[10].mxu0  ;;  %v5014_v32 = vld [vmem:[#allocation10 + $0x284] ss:$16 sps:$4 sm:$0xff]   ;;  %v5053_v59 = vld [vmem:[#allocation10 + $0x34c] ss:$16 sps:$4 sm:$0xff]  }
 0x1bc   :  { %v887_v11 = vadd.f32 %v886_v60, %v846_v62  ;;  %v850_v14 = vpop.f32.mrb[11].mxu1  ;;  %v891_v15 = vpop.f32.mrb[11].mxu0  ;;  %v5048_v60 = vld [vmem:[#allocation10 + $0x340] ss:$16 sps:$4 sm:$0xff]   ;;  %v5051_v61 = vld [vmem:[#allocation10 + $0x348] ss:$16 sps:$4 sm:$0xff]  }
 0x1bd   :  { %v889_v16 = vadd.f32 %v888_v2, %v848_v3  ;;  %1749 = vmatprep.mubr.bf16.mxu0 %v924_v5  ;;  %1831 = vmatprep.mubr.bf16.mxu1 %v924_v5  ;;  %v5056_v62 = vld [vmem:[#allocation10 + $0x364] ss:$16 sps:$4 sm:$0xff]   ;;  %v5059_v63 = vld [vmem:[#allocation10 + $0x36c] ss:$16 sps:$4 sm:$0xff]   ;;  %v5057_v2 = vld [vmem:[#allocation10 + $0x368] ss:$16 sps:$4 sm:$0xff]  }
 0x1be   :  { %v5930_v17 = vadd.f32 %v906_v1, %v887_v11  ;;  %1750 = vmatmul.mubr.bf16.vlgmr.msra.gmra.mrb[12].mxu0 %v923_v10  ;;  %1832 = vmatmul.mubr.bf16.vlgmr.msra.gmra.mrb[12].mxu1 %v923_v10  ;;  %v5054_v1 = vld [vmem:[#allocation10 + $0x360] ss:$16 sps:$4 sm:$0xff]   ;;  %v5062_v3 = vld [vmem:[#allocation10 + $0x384] ss:$16 sps:$4 sm:$0xff]   ;;  %v5071_v8 = vld [vmem:[#allocation10 + $0x3ac] ss:$16 sps:$4 sm:$0xff]  }
 0x1bf   :  { %v918_v18 = vadd.f32 %v910_v4, %v889_v16  ;;  %1759 = vmatpush1.bf16.msra.mxu0 %v4988_v6  ;;  %1841 = vmatpush1.bf16.msra.mxu1 %v4991_v7  ;;  %v5065_v4 = vld [vmem:[#allocation10 + $0x38c] ss:$16 sps:$4 sm:$0xff]   ;;  %v5060_v5 = vld [vmem:[#allocation10 + $0x380] ss:$16 sps:$4 sm:$0xff]   ;;  %v5063_v6 = vld [vmem:[#allocation10 + $0x388] ss:$16 sps:$4 sm:$0xff]  }
 0x1c0   :  { %1760 = vmatprep.subr.bf16.mxu0 %v4996_v12  ;;  %1842 = vmatprep.subr.bf16.mxu1 %v4999_v13  ;;  %v5068_v7 = vld [vmem:[#allocation10 + $0x3a4] ss:$16 sps:$4 sm:$0xff]   ;;  %v5066_v9 = vld [vmem:[#allocation10 + $0x3a0] ss:$16 sps:$4 sm:$0xff]   ;;  %v5069_v10 = vld [vmem:[#allocation10 + $0x3a8] ss:$16 sps:$4 sm:$0xff]  }
 0x1c1   :  { %v922_v23 = vmax.f32 %v918_v18, 0.0  ;;  %v5074_v11 = vld [vmem:[#allocation10 + $0x3c4] ss:$16 sps:$4 sm:$0xff]   ;;  %v5077_v12 = vld [vmem:[#allocation10 + $0x3cc] ss:$16 sps:$4 sm:$0xff]  }
 0x1c2   :  { %v5072_v13 = vld [vmem:[#allocation10 + $0x3c0] ss:$16 sps:$4 sm:$0xff]   ;;  %v5075_v14 = vld [vmem:[#allocation10 + $0x3c8] ss:$16 sps:$4 sm:$0xff]   ;;  %v5080_v15 = vld [vmem:[#allocation10 + $0x3e4] ss:$16 sps:$4 sm:$0xff]  }
 0x1c3   :  { %v926_v25 = vpack.c.bf16 %v922_v23, %v922_v23  ;;  %1761 = vmatpush1.bf16.msra.mxu0 %v4994_v19  ;;  %1843 = vmatpush1.bf16.msra.mxu1 %v4997_v20  ;;  %v5083_v16 = vld [vmem:[#allocation10 + $0x3ec] ss:$16 sps:$4 sm:$0xff]   ;;  %v5078_v18 = vld [vmem:[#allocation10 + $0x3e0] ss:$16 sps:$4 sm:$0xff]   ;;  %v5081_v19 = vld [vmem:[#allocation10 + $0x3e8] ss:$16 sps:$4 sm:$0xff]  }
 0x1c4   :  { %1762 = vmatprep.subr.bf16.mxu0 %v5002_v21  ;;  %1844 = vmatprep.subr.bf16.mxu1 %v5005_v22  ;;  %v921_v20 = vmax.f32 %v5930_v17, 0.0  ;;  %v5086_v21 = vld [vmem:[#allocation11 + $0x4] ss:$16 sps:$4 sm:$0xff]   ;;  %v5089_v22 = vld [vmem:[#allocation11 + $0xc] ss:$16 sps:$4 sm:$0xff]  }
 0x1c5   :  { %1790 = vmatprep.mubr.bf16.mxu0 %v926_v25  ;;  %1872 = vmatprep.mubr.bf16.mxu1 %v926_v25  ;;  %v5084_v23 = vld [vmem:[#allocation11] ss:$16 sps:$4 sm:$0xff]   ;;  %v5087_v25 = vld [vmem:[#allocation11 + $0x8] ss:$16 sps:$4 sm:$0xff]   ;;  %v5098_v17 = vld [vmem:[#allocation11 + $0x44] ss:$16 sps:$4 sm:$0xff]  }
 0x1c7   :  { %1763 = vmatpush1.bf16.msra.mxu0 %v5000_v26  ;;  %1845 = vmatpush1.bf16.msra.mxu1 %v5003_v27  ;;  %v925_v26 = vpack.c.bf16 %v921_v20, %v921_v20  ;;  %v5092_v27 = vld [vmem:[#allocation11 + $0x24] ss:$16 sps:$4 sm:$0xff]   ;;  %v5168_v20 = vld [vmem:[#allocation11 + $0x1c0] ss:$16 sps:$4 sm:$0xff]  }
 0x1c8   :  { %1764 = vmatprep.subr.bf16.mxu0 %v5008_v28  ;;  %1846 = vmatprep.subr.bf16.mxu1 %v5011_v29  ;;  %v5095_v28 = vld [vmem:[#allocation11 + $0x2c] ss:$16 sps:$4 sm:$0xff]   ;;  %v5090_v29 = vld [vmem:[#allocation11 + $0x20] ss:$16 sps:$4 sm:$0xff]  }
 0x1cb   :  { %1765 = vmatpush1.bf16.msra.mxu0 %v5006_v30  ;;  %1847 = vmatpush1.bf16.msra.mxu1 %v5009_v31  ;;  %v5093_v30 = vld [vmem:[#allocation11 + $0x28] ss:$16 sps:$4 sm:$0xff]   ;;  %v5101_v31 = vld [vmem:[#allocation11 + $0x4c] ss:$16 sps:$4 sm:$0xff]  }
 0x1cc   :  { %1766 = vmatprep.subr.bf16.mxu0 %v5014_v32  ;;  %1848 = vmatprep.subr.bf16.mxu1 %v5017_v33  ;;  %v5096_v32 = vld [vmem:[#allocation11 + $0x40] ss:$16 sps:$4 sm:$0xff]   ;;  %v5099_v33 = vld [vmem:[#allocation11 + $0x48] ss:$16 sps:$4 sm:$0xff]  }
 0x1cf   :  { %1767 = vmatpush1.bf16.msra.mxu0 %v5012_v34  ;;  %1849 = vmatpush1.bf16.msra.mxu1 %v5015_v35  ;;  %v5104_v34 = vld [vmem:[#allocation11 + $0x64] ss:$16 sps:$4 sm:$0xff]   ;;  %v5107_v35 = vld [vmem:[#allocation11 + $0x6c] ss:$16 sps:$4 sm:$0xff]  }
 0x1d0   :  { %1768 = vmatprep.subr.bf16.mxu0 %v5020_v0  ;;  %1850 = vmatprep.subr.bf16.mxu1 %v5023_v36  ;;  %v5102_v0 = vld [vmem:[#allocation11 + $0x60] ss:$16 sps:$4 sm:$0xff]   ;;  %v5105_v36 = vld [vmem:[#allocation11 + $0x68] ss:$16 sps:$4 sm:$0xff]  }
 0x1d3   :  { %1769 = vmatpush1.bf16.msra.mxu0 %v5018_v24  ;;  %1851 = vmatpush1.bf16.msra.mxu1 %v5021_v37  ;;  %v5110_v24 = vld [vmem:[#allocation11 + $0x84] ss:$16 sps:$4 sm:$0xff]   ;;  %v5113_v37 = vld [vmem:[#allocation11 + $0x8c] ss:$16 sps:$4 sm:$0xff]  }
 0x1d4   :  { %1770 = vmatprep.subr.bf16.mxu0 %v5026_v38  ;;  %1852 = vmatprep.subr.bf16.mxu1 %v5029_v39  ;;  %v5108_v38 = vld [vmem:[#allocation11 + $0x80] ss:$16 sps:$4 sm:$0xff]   ;;  %v5111_v39 = vld [vmem:[#allocation11 + $0x88] ss:$16 sps:$4 sm:$0xff]  }
 0x1d7   :  { %1771 = vmatpush1.bf16.msra.mxu0 %v5024_v40  ;;  %1853 = vmatpush1.bf16.msra.mxu1 %v5027_v42  ;;  %v5116_v40 = vld [vmem:[#allocation11 + $0xa4] ss:$16 sps:$4 sm:$0xff]   ;;  %v5119_v42 = vld [vmem:[#allocation11 + $0xac] ss:$16 sps:$4 sm:$0xff]  }
 0x1d8   :  { %1772 = vmatprep.subr.bf16.mxu0 %v5032_v44  ;;  %1854 = vmatprep.subr.bf16.mxu1 %v5035_v45  ;;  %v5114_v44 = vld [vmem:[#allocation11 + $0xa0] ss:$16 sps:$4 sm:$0xff]   ;;  %v5117_v45 = vld [vmem:[#allocation11 + $0xa8] ss:$16 sps:$4 sm:$0xff]  }
 0x1db   :  { %1773 = vmatpush1.bf16.msra.mxu0 %v5030_v46  ;;  %1855 = vmatpush1.bf16.msra.mxu1 %v5033_v47  ;;  %v5122_v46 = vld [vmem:[#allocation11 + $0xc4] ss:$16 sps:$4 sm:$0xff]   ;;  %v5125_v47 = vld [vmem:[#allocation11 + $0xcc] ss:$16 sps:$4 sm:$0xff]  }
 0x1dc   :  { %1774 = vmatprep.subr.bf16.mxu0 %v5038_v48  ;;  %1856 = vmatprep.subr.bf16.mxu1 %v5041_v49  ;;  %v5120_v48 = vld [vmem:[#allocation11 + $0xc0] ss:$16 sps:$4 sm:$0xff]   ;;  %v5123_v49 = vld [vmem:[#allocation11 + $0xc8] ss:$16 sps:$4 sm:$0xff]  }
 0x1df   :  { %1775 = vmatpush1.bf16.msra.mxu0 %v5036_v50  ;;  %1857 = vmatpush1.bf16.msra.mxu1 %v5039_v51  ;;  %v5128_v50 = vld [vmem:[#allocation11 + $0xe4] ss:$16 sps:$4 sm:$0xff]   ;;  %v5131_v51 = vld [vmem:[#allocation11 + $0xec] ss:$16 sps:$4 sm:$0xff]  }
 0x1e0   :  { %1776 = vmatprep.subr.bf16.mxu0 %v5044_v52  ;;  %1858 = vmatprep.subr.bf16.mxu1 %v5047_v53  ;;  %v5126_v52 = vld [vmem:[#allocation11 + $0xe0] ss:$16 sps:$4 sm:$0xff]   ;;  %v5129_v53 = vld [vmem:[#allocation11 + $0xe8] ss:$16 sps:$4 sm:$0xff]  }
 0x1e3   :  { %1777 = vmatpush1.bf16.msra.mxu0 %v5042_v54  ;;  %1859 = vmatpush1.bf16.msra.mxu1 %v5045_v56  ;;  %v5134_v54 = vld [vmem:[#allocation11 + $0x104] ss:$16 sps:$4 sm:$0xff]   ;;  %v5137_v56 = vld [vmem:[#allocation11 + $0x10c] ss:$16 sps:$4 sm:$0xff]  }
 0x1e4   :  { %1778 = vmatprep.subr.bf16.mxu0 %v5050_v58  ;;  %1860 = vmatprep.subr.bf16.mxu1 %v5053_v59  ;;  %v5132_v58 = vld [vmem:[#allocation11 + $0x100] ss:$16 sps:$4 sm:$0xff]   ;;  %v5135_v59 = vld [vmem:[#allocation11 + $0x108] ss:$16 sps:$4 sm:$0xff]  }
 0x1e7   :  { %1779 = vmatpush1.bf16.msra.mxu0 %v5048_v60  ;;  %1861 = vmatpush1.bf16.msra.mxu1 %v5051_v61  ;;  %v5140_v60 = vld [vmem:[#allocation11 + $0x124] ss:$16 sps:$4 sm:$0xff]   ;;  %v5143_v61 = vld [vmem:[#allocation11 + $0x12c] ss:$16 sps:$4 sm:$0xff]  }
 0x1e8   :  { %1780 = vmatprep.subr.bf16.mxu0 %v5056_v62  ;;  %1862 = vmatprep.subr.bf16.mxu1 %v5059_v63  ;;  %v5138_v62 = vld [vmem:[#allocation11 + $0x120] ss:$16 sps:$4 sm:$0xff]   ;;  %v5141_v63 = vld [vmem:[#allocation11 + $0x128] ss:$16 sps:$4 sm:$0xff]  }
 0x1eb   :  { %1781 = vmatpush1.bf16.msra.mxu0 %v5054_v1  ;;  %1863 = vmatpush1.bf16.msra.mxu1 %v5057_v2  ;;  %v5146_v1 = vld [vmem:[#allocation11 + $0x144] ss:$16 sps:$4 sm:$0xff]   ;;  %v5149_v2 = vld [vmem:[#allocation11 + $0x14c] ss:$16 sps:$4 sm:$0xff]  }
 0x1ec   :  { %1782 = vmatprep.subr.bf16.mxu0 %v5062_v3  ;;  %1864 = vmatprep.subr.bf16.mxu1 %v5065_v4  ;;  %v5144_v3 = vld [vmem:[#allocation11 + $0x140] ss:$16 sps:$4 sm:$0xff]   ;;  %v5147_v4 = vld [vmem:[#allocation11 + $0x148] ss:$16 sps:$4 sm:$0xff]  }
 0x1ef   :  { %1783 = vmatpush1.bf16.msra.mxu0 %v5060_v5  ;;  %1865 = vmatpush1.bf16.msra.mxu1 %v5063_v6  ;;  %v5152_v5 = vld [vmem:[#allocation11 + $0x164] ss:$16 sps:$4 sm:$0xff]   ;;  %v5155_v6 = vld [vmem:[#allocation11 + $0x16c] ss:$16 sps:$4 sm:$0xff]  }
 0x1f0   :  { %1784 = vmatprep.subr.bf16.mxu0 %v5068_v7  ;;  %1866 = vmatprep.subr.bf16.mxu1 %v5071_v8  ;;  %v5150_v7 = vld [vmem:[#allocation11 + $0x160] ss:$16 sps:$4 sm:$0xff]   ;;  %v5153_v8 = vld [vmem:[#allocation11 + $0x168] ss:$16 sps:$4 sm:$0xff]  }
 0x1f3   :  { %1785 = vmatpush1.bf16.msra.mxu0 %v5066_v9  ;;  %1867 = vmatpush1.bf16.msra.mxu1 %v5069_v10  ;;  %v5158_v9 = vld [vmem:[#allocation11 + $0x184] ss:$16 sps:$4 sm:$0xff]   ;;  %v5161_v10 = vld [vmem:[#allocation11 + $0x18c] ss:$16 sps:$4 sm:$0xff]  }
 0x1f4   :  { %1786 = vmatprep.subr.bf16.mxu0 %v5074_v11  ;;  %1868 = vmatprep.subr.bf16.mxu1 %v5077_v12  ;;  %v5156_v11 = vld [vmem:[#allocation11 + $0x180] ss:$16 sps:$4 sm:$0xff]   ;;  %v5159_v12 = vld [vmem:[#allocation11 + $0x188] ss:$16 sps:$4 sm:$0xff]  }
 0x1f7   :  { %1787 = vmatpush1.bf16.msra.mxu0 %v5072_v13  ;;  %1869 = vmatpush1.bf16.msra.mxu1 %v5075_v14  ;;  %v5164_v13 = vld [vmem:[#allocation11 + $0x1a4] ss:$16 sps:$4 sm:$0xff]   ;;  %v5167_v14 = vld [vmem:[#allocation11 + $0x1ac] ss:$16 sps:$4 sm:$0xff]  }
 0x1f8   :  { %1788 = vmatprep.subr.bf16.mxu0 %v5080_v15  ;;  %1870 = vmatprep.subr.bf16.mxu1 %v5083_v16  ;;  %v5162_v15 = vld [vmem:[#allocation11 + $0x1a0] ss:$16 sps:$4 sm:$0xff]   ;;  %v5165_v16 = vld [vmem:[#allocation11 + $0x1a8] ss:$16 sps:$4 sm:$0xff]  }
 0x1fb   :  { %1789 = vmatpush1.bf16.msra.mxu0 %v5078_v18  ;;  %1871 = vmatpush1.bf16.msra.mxu1 %v5081_v19  ;;  %v5170_v18 = vld [vmem:[#allocation11 + $0x1c4] ss:$16 sps:$4 sm:$0xff]   ;;  %v5173_v19 = vld [vmem:[#allocation11 + $0x1cc] ss:$16 sps:$4 sm:$0xff]  }
 0x1fc   :  { %2679 = vmatprep.subr.bf16.mxu0 %v5086_v21  ;;  %2761 = vmatprep.subr.bf16.mxu1 %v5089_v22  ;;  %v5171_v21 = vld [vmem:[#allocation11 + $0x1c8] ss:$16 sps:$4 sm:$0xff]   ;;  %v5176_v22 = vld [vmem:[#allocation11 + $0x1e4] ss:$16 sps:$4 sm:$0xff]  }
 0x1fe   :  { %1791 = vmatmul.mubr.bf16.vlgmr.msra.gmra.mrb[12].mxu0 %v925_v26  ;;  %1873 = vmatmul.mubr.bf16.vlgmr.msra.gmra.mrb[12].mxu1 %v925_v26  ;;  %v5177_v26 = vld [vmem:[#allocation11 + $0x1e8] ss:$16 sps:$4 sm:$0xff]  }
 0x1ff   :  { %2680 = vmatpush1.bf16.msra.mxu0 %v5084_v23  ;;  %2762 = vmatpush1.bf16.msra.mxu1 %v5087_v25  ;;  %v5179_v23 = vld [vmem:[#allocation11 + $0x1ec] ss:$16 sps:$4 sm:$0xff]   ;;  %v5174_v25 = vld [vmem:[#allocation11 + $0x1e0] ss:$16 sps:$4 sm:$0xff]  }
 0x200   :  { %2681 = vmatprep.subr.bf16.mxu0 %v5092_v27  ;;  %2763 = vmatprep.subr.bf16.mxu1 %v5095_v28  ;;  %v5182_v27 = vld [vmem:[#allocation11 + $0x204] ss:$16 sps:$4 sm:$0xff]   ;;  %v5185_v28 = vld [vmem:[#allocation11 + $0x20c] ss:$16 sps:$4 sm:$0xff]  }
 0x203   :  { %2682 = vmatpush1.bf16.msra.mxu0 %v5090_v29  ;;  %2764 = vmatpush1.bf16.msra.mxu1 %v5093_v30  ;;  %v5936_v29 = vld [vmem:[%s5993_s6] sm:$0xf] }
 0x204   :  { %2683 = vmatprep.subr.bf16.mxu0 %v5098_v17  ;;  %2765 = vmatprep.subr.bf16.mxu1 %v5101_v31  ;;  %v1060_v30 = vrot.slane %v5936_v29, %v5915_v41  ;;  %v1064_v17 = vrot.slane %v5936_v29, %v5920_v43  ;;  %v1072_v31 = vrot.slane %v5936_v29, %v5926_v57 }
 0x207   :  { %2684 = vmatpush1.bf16.msra.mxu0 %v5096_v32  ;;  %2766 = vmatpush1.bf16.msra.mxu1 %v5099_v33 }
 0x208   :  { %2685 = vmatprep.subr.bf16.mxu0 %v5104_v34  ;;  %2767 = vmatprep.subr.bf16.mxu1 %v5107_v35 }
 0x20b   :  { %2686 = vmatpush1.bf16.msra.mxu0 %v5102_v0  ;;  %2768 = vmatpush1.bf16.msra.mxu1 %v5105_v36 }
 0x20c   :  { %2687 = vmatprep.subr.bf16.mxu0 %v5110_v24  ;;  %2769 = vmatprep.subr.bf16.mxu1 %v5113_v37 }
 0x20f   :  { %2688 = vmatpush1.bf16.msra.mxu0 %v5108_v38  ;;  %2770 = vmatpush1.bf16.msra.mxu1 %v5111_v39 }
 0x210   :  { %2689 = vmatprep.subr.bf16.mxu0 %v5116_v40  ;;  %2771 = vmatprep.subr.bf16.mxu1 %v5119_v42 }
 0x213   :  { %2690 = vmatpush1.bf16.msra.mxu0 %v5114_v44  ;;  %2772 = vmatpush1.bf16.msra.mxu1 %v5117_v45 }
 0x214   :  { %2691 = vmatprep.subr.bf16.mxu0 %v5122_v46  ;;  %2773 = vmatprep.subr.bf16.mxu1 %v5125_v47  ;;  %v5180_v47 = vld [vmem:[#allocation11 + $0x200] ss:$16 sps:$4 sm:$0xff]  }
 0x217   :  { %2692 = vmatpush1.bf16.msra.mxu0 %v5120_v48  ;;  %2774 = vmatpush1.bf16.msra.mxu1 %v5123_v49  ;;  %v5183_v48 = vld [vmem:[#allocation11 + $0x208] ss:$16 sps:$4 sm:$0xff]  }
 0x218   :  { %2693 = vmatprep.subr.bf16.mxu0 %v5128_v50  ;;  %2775 = vmatprep.subr.bf16.mxu1 %v5131_v51  ;;  %v5188_v50 = vld [vmem:[#allocation11 + $0x224] ss:$16 sps:$4 sm:$0xff]   ;;  %v5191_v51 = vld [vmem:[#allocation11 + $0x22c] ss:$16 sps:$4 sm:$0xff]  }
 0x21b   :  { %2694 = vmatpush1.bf16.msra.mxu0 %v5126_v52  ;;  %2776 = vmatpush1.bf16.msra.mxu1 %v5129_v53  ;;  %v5186_v53 = vld [vmem:[#allocation11 + $0x220] ss:$16 sps:$4 sm:$0xff]  }
 0x21c   :  { %2695 = vmatprep.subr.bf16.mxu0 %v5134_v54  ;;  %2777 = vmatprep.subr.bf16.mxu1 %v5137_v56  ;;  %v5189_v54 = vld [vmem:[#allocation11 + $0x228] ss:$16 sps:$4 sm:$0xff]   ;;  %v5194_v56 = vld [vmem:[#allocation11 + $0x244] ss:$16 sps:$4 sm:$0xff]  }
 0x21f   :  { %2696 = vmatpush1.bf16.msra.mxu0 %v5132_v58  ;;  %2778 = vmatpush1.bf16.msra.mxu1 %v5135_v59  ;;  %v5197_v58 = vld [vmem:[#allocation11 + $0x24c] ss:$16 sps:$4 sm:$0xff]   ;;  %v5192_v59 = vld [vmem:[#allocation11 + $0x240] ss:$16 sps:$4 sm:$0xff]  }
 0x220   :  { %2697 = vmatprep.subr.bf16.mxu0 %v5140_v60  ;;  %2779 = vmatprep.subr.bf16.mxu1 %v5143_v61  ;;  %v5195_v60 = vld [vmem:[#allocation11 + $0x248] ss:$16 sps:$4 sm:$0xff]   ;;  %v5200_v61 = vld [vmem:[#allocation11 + $0x264] ss:$16 sps:$4 sm:$0xff]  }
 0x223   :  { %2698 = vmatpush1.bf16.msra.mxu0 %v5138_v62  ;;  %2780 = vmatpush1.bf16.msra.mxu1 %v5141_v63  ;;  %v5203_v62 = vld [vmem:[#allocation11 + $0x26c] ss:$16 sps:$4 sm:$0xff]   ;;  %v5198_v63 = vld [vmem:[#allocation11 + $0x260] ss:$16 sps:$4 sm:$0xff]  }
 0x224   :  { %2699 = vmatprep.subr.bf16.mxu0 %v5146_v1  ;;  %2781 = vmatprep.subr.bf16.mxu1 %v5149_v2  ;;  %v5201_v1 = vld [vmem:[#allocation11 + $0x268] ss:$16 sps:$4 sm:$0xff]   ;;  %v5206_v2 = vld [vmem:[#allocation11 + $0x284] ss:$16 sps:$4 sm:$0xff]  }
 0x227   :  { %2700 = vmatpush1.bf16.msra.mxu0 %v5144_v3  ;;  %2782 = vmatpush1.bf16.msra.mxu1 %v5147_v4  ;;  %v5209_v3 = vld [vmem:[#allocation11 + $0x28c] ss:$16 sps:$4 sm:$0xff]   ;;  %v5204_v4 = vld [vmem:[#allocation11 + $0x280] ss:$16 sps:$4 sm:$0xff]  }
 0x228   :  { %2701 = vmatprep.subr.bf16.mxu0 %v5152_v5  ;;  %2783 = vmatprep.subr.bf16.mxu1 %v5155_v6  ;;  %v5207_v5 = vld [vmem:[#allocation11 + $0x288] ss:$16 sps:$4 sm:$0xff]   ;;  %v5212_v6 = vld [vmem:[#allocation11 + $0x2a4] ss:$16 sps:$4 sm:$0xff]  }
 0x22b   :  { %2702 = vmatpush1.bf16.msra.mxu0 %v5150_v7  ;;  %2784 = vmatpush1.bf16.msra.mxu1 %v5153_v8  ;;  %v5215_v7 = vld [vmem:[#allocation11 + $0x2ac] ss:$16 sps:$4 sm:$0xff]   ;;  %v5210_v8 = vld [vmem:[#allocation11 + $0x2a0] ss:$16 sps:$4 sm:$0xff]  }
 0x22c   :  { %2703 = vmatprep.subr.bf16.mxu0 %v5158_v9  ;;  %2785 = vmatprep.subr.bf16.mxu1 %v5161_v10  ;;  %v5213_v9 = vld [vmem:[#allocation11 + $0x2a8] ss:$16 sps:$4 sm:$0xff]   ;;  %v5218_v10 = vld [vmem:[#allocation11 + $0x2c4] ss:$16 sps:$4 sm:$0xff]  }
 0x22f   :  { %2704 = vmatpush1.bf16.msra.mxu0 %v5156_v11  ;;  %2786 = vmatpush1.bf16.msra.mxu1 %v5159_v12  ;;  %v5221_v11 = vld [vmem:[#allocation11 + $0x2cc] ss:$16 sps:$4 sm:$0xff]   ;;  %v5216_v12 = vld [vmem:[#allocation11 + $0x2c0] ss:$16 sps:$4 sm:$0xff]  }
 0x230   :  { %2705 = vmatprep.subr.bf16.mxu0 %v5164_v13  ;;  %2787 = vmatprep.subr.bf16.mxu1 %v5167_v14  ;;  %v5219_v13 = vld [vmem:[#allocation11 + $0x2c8] ss:$16 sps:$4 sm:$0xff]   ;;  %v5224_v14 = vld [vmem:[#allocation11 + $0x2e4] ss:$16 sps:$4 sm:$0xff]  }
 0x233   :  { %2706 = vmatpush1.bf16.msra.mxu0 %v5162_v15  ;;  %2788 = vmatpush1.bf16.msra.mxu1 %v5165_v16  ;;  %v5227_v15 = vld [vmem:[#allocation11 + $0x2ec] ss:$16 sps:$4 sm:$0xff]   ;;  %v5222_v16 = vld [vmem:[#allocation11 + $0x2e0] ss:$16 sps:$4 sm:$0xff]  }
 0x234   :  { %2707 = vmatprep.subr.bf16.mxu0 %v5170_v18  ;;  %2789 = vmatprep.subr.bf16.mxu1 %v5173_v19  ;;  %v5225_v18 = vld [vmem:[#allocation11 + $0x2e8] ss:$16 sps:$4 sm:$0xff]   ;;  %v5230_v19 = vld [vmem:[#allocation11 + $0x304] ss:$16 sps:$4 sm:$0xff]  }
 0x237   :  { %2708 = vmatpush1.bf16.msra.mxu0 %v5168_v20  ;;  %2790 = vmatpush1.bf16.msra.mxu1 %v5171_v21  ;;  %v5233_v20 = vld [vmem:[#allocation11 + $0x30c] ss:$16 sps:$4 sm:$0xff]   ;;  %v5228_v21 = vld [vmem:[#allocation11 + $0x300] ss:$16 sps:$4 sm:$0xff]  }
 0x238   :  { %2709 = vmatprep.subr.bf16.mxu0 %v5176_v22  ;;  %2791 = vmatprep.subr.bf16.mxu1 %v5179_v23  ;;  %v5231_v22 = vld [vmem:[#allocation11 + $0x308] ss:$16 sps:$4 sm:$0xff]   ;;  %v5236_v23 = vld [vmem:[#allocation11 + $0x324] ss:$16 sps:$4 sm:$0xff]  }
 0x23b   :  { %2710 = vmatpush1.bf16.msra.mxu0 %v5174_v25  ;;  %2792 = vmatpush1.bf16.msra.mxu1 %v5177_v26  ;;  %v5239_v25 = vld [vmem:[#allocation11 + $0x32c] ss:$16 sps:$4 sm:$0xff]   ;;  %v5234_v26 = vld [vmem:[#allocation11 + $0x320] ss:$16 sps:$4 sm:$0xff]  }
 0x23c   :  { %2720 = vmatprep.subr.bf16.mxu0 %v5182_v27  ;;  %2802 = vmatprep.subr.bf16.mxu1 %v5185_v28  ;;  %v5237_v27 = vld [vmem:[#allocation11 + $0x328] ss:$16 sps:$4 sm:$0xff]   ;;  %v5242_v28 = vld [vmem:[#allocation11 + $0x344] ss:$16 sps:$4 sm:$0xff]  }
 0x2d1   :  { %v1792_v32 = vpop.f32.mrb[12].mxu0  ;;  %v5944_v33 = vpop.f32.mrb[12].mxu1 }
 0x2d2   :  { %v4722_v34 = vadd.f32 %v1792_v32, %v1060_v30  ;;  %v1794_v35 = vpop.f32.mrb[13].mxu0  ;;  %v1876_v0 = vpop.f32.mrb[13].mxu1  ;;  %v5245_v30 = vld [vmem:[#allocation11 + $0x34c] ss:$16 sps:$4 sm:$0xff]   ;;  %v5248_v32 = vld [vmem:[#allocation11 + $0x364] ss:$16 sps:$4 sm:$0xff]  }
 0x2d3   :  { %v4723_v36 = vadd.f32 %v1794_v35, %v1064_v17  ;;  %v4725_v24 = vadd.f32 %v1876_v0, %v1072_v31  ;;  %v1796_v37 = vpop.f32.mrb[14].mxu0  ;;  %v1878_v38 = vpop.f32.mrb[14].mxu1  ;;  %v5240_v17 = vld [vmem:[#allocation11 + $0x340] ss:$16 sps:$4 sm:$0xff]   ;;  %v5243_v31 = vld [vmem:[#allocation11 + $0x348] ss:$16 sps:$4 sm:$0xff]  }
 0x2d4   :  { %v1881_v39 = vmax.f32 %v4722_v34, 0.0  ;;  %v1797_v40 = vpop.f32.mrb[15].mxu0  ;;  %v1879_v42 = vpop.f32.mrb[15].mxu1  ;;  %v5251_v34 = vld [vmem:[#allocation11 + $0x36c] ss:$16 sps:$4 sm:$0xff]  }
 0x2d5   :  { %v1882_v44 = vmax.f32 %v4723_v36, 0.0  ;;  %v1884_v45 = vmax.f32 %v4725_v24, 0.0  ;;  %v5246_v35 = vld [vmem:[#allocation11 + $0x360] ss:$16 sps:$4 sm:$0xff]   ;;  %v5249_v0 = vld [vmem:[#allocation11 + $0x368] ss:$16 sps:$4 sm:$0xff]  }
 0x2d6   :  { %v1885_v49 = vpack.c.bf16 %v1881_v39, %v1881_v39  ;;  %v5254_v36 = vld [vmem:[#allocation11 + $0x384] ss:$16 sps:$4 sm:$0xff]   ;;  %v5257_v24 = vld [vmem:[#allocation11 + $0x38c] ss:$16 sps:$4 sm:$0xff]   ;;  %v5252_v37 = vld [vmem:[#allocation11 + $0x380] ss:$16 sps:$4 sm:$0xff]  }
 0x2d7   :  { %v1886_v46 = vpack.c.bf16 %v1882_v44, %v1882_v44  ;;  %v1888_v52 = vpack.c.bf16 %v1884_v45, %v1884_v45  ;;  %v5255_v38 = vld [vmem:[#allocation11 + $0x388] ss:$16 sps:$4 sm:$0xff]   ;;  %v5260_v39 = vld [vmem:[#allocation11 + $0x3a4] ss:$16 sps:$4 sm:$0xff]   ;;  %v5263_v40 = vld [vmem:[#allocation11 + $0x3ac] ss:$16 sps:$4 sm:$0xff]   ;;  %v1068_v45 = vrot.slane %v5936_v29, %v5924_v55 }
 0x2d8   :  { %v5258_v42 = vld [vmem:[#allocation11 + $0x3a0] ss:$16 sps:$4 sm:$0xff]   ;;  %v5261_v44 = vld [vmem:[#allocation11 + $0x3a8] ss:$16 sps:$4 sm:$0xff]   ;;  %v5278_v29 = vld [vmem:[#allocation13 + $0x4] ss:$16 sps:$4 sm:$0xff]  }
 0x2d9   :  { %2711 = vmatprep.mubr.bf16.mxu0 %v1886_v46  ;;  %2793 = vmatprep.mubr.bf16.mxu1 %v1886_v46  ;;  %v5266_v46 = vld [vmem:[#allocation11 + $0x3c4] ss:$16 sps:$4 sm:$0xff]  }
 0x2da   :  { %2712 = vmatmul.mubr.bf16.vlgmr.msra.gmra.mrb[16].mxu0 %v1885_v49  ;;  %2794 = vmatmul.mubr.bf16.vlgmr.msra.gmra.mrb[16].mxu1 %v1885_v49  ;;  %v5267_v49 = vld [vmem:[#allocation11 + $0x3c8] ss:$16 sps:$4 sm:$0xff]  }
 0x2db   :  { %2721 = vmatpush1.bf16.msra.mxu0 %v5180_v47  ;;  %2803 = vmatpush1.bf16.msra.mxu1 %v5183_v48  ;;  %v5269_v47 = vld [vmem:[#allocation11 + $0x3cc] ss:$16 sps:$4 sm:$0xff]   ;;  %v5264_v48 = vld [vmem:[#allocation11 + $0x3c0] ss:$16 sps:$4 sm:$0xff]  }
 0x2dc   :  { %2752 = vmatprep.mubr.bf16.mxu0 %v1888_v52  ;;  %2834 = vmatprep.mubr.bf16.mxu1 %v1888_v52  ;;  %v5275_v52 = vld [vmem:[#allocation11 + $0x3ec] ss:$16 sps:$4 sm:$0xff]  }
 0x2dd   :  { %2722 = vmatprep.subr.bf16.mxu0 %v5188_v50  ;;  %2804 = vmatprep.subr.bf16.mxu1 %v5191_v51  ;;  %v4724_v50 = vadd.f32 %v5944_v33, %v1068_v45  ;;  %v5272_v51 = vld [vmem:[#allocation11 + $0x3e4] ss:$16 sps:$4 sm:$0xff]  }
 0x2de   :  { %v5284_v33 = vld [vmem:[#allocation13 + $0x24] ss:$16 sps:$4 sm:$0xff]  }
 0x2df   :  { %2723 = vmatpush1.bf16.msra.mxu0 %v5186_v53  ;;  %2805 = vmatpush1.bf16.msra.mxu1 %v5189_v54  ;;  %v5270_v53 = vld [vmem:[#allocation11 + $0x3e0] ss:$16 sps:$4 sm:$0xff]   ;;  %v5273_v54 = vld [vmem:[#allocation11 + $0x3e8] ss:$16 sps:$4 sm:$0xff]   ;;  %v5350_v45 = vld [vmem:[#allocation13 + $0x184] ss:$16 sps:$4 sm:$0xff]  }
 0x2e0   :  { %2724 = vmatprep.subr.bf16.mxu0 %v5194_v56  ;;  %2806 = vmatprep.subr.bf16.mxu1 %v5197_v58  ;;  %v1883_v56 = vmax.f32 %v4724_v50, 0.0  ;;  %v5281_v58 = vld [vmem:[#allocation13 + $0xc] ss:$16 sps:$4 sm:$0xff]  }
 0x2e1   :  { %v5359_v50 = vld [vmem:[#allocation13 + $0x1ac] ss:$16 sps:$4 sm:$0xff]  }
 0x2e3   :  { %2725 = vmatpush1.bf16.msra.mxu0 %v5192_v59  ;;  %2807 = vmatpush1.bf16.msra.mxu1 %v5195_v60  ;;  %v5276_v59 = vld [vmem:[#allocation13] ss:$16 sps:$4 sm:$0xff]   ;;  %v5279_v60 = vld [vmem:[#allocation13 + $0x8] ss:$16 sps:$4 sm:$0xff]  }
 0x2e4   :  { %2726 = vmatprep.subr.bf16.mxu0 %v5200_v61  ;;  %2808 = vmatprep.subr.bf16.mxu1 %v5203_v62  ;;  %v1887_v61 = vpack.c.bf16 %v1883_v56, %v1883_v56  ;;  %v5287_v62 = vld [vmem:[#allocation13 + $0x2c] ss:$16 sps:$4 sm:$0xff]   ;;  %v5360_v56 = vld [vmem:[#allocation13 + $0x1c0] ss:$16 sps:$4 sm:$0xff]  }
 0x2e7   :  { %2727 = vmatpush1.bf16.msra.mxu0 %v5198_v63  ;;  %2809 = vmatpush1.bf16.msra.mxu1 %v5201_v1  ;;  %v5282_v63 = vld [vmem:[#allocation13 + $0x20] ss:$16 sps:$4 sm:$0xff]   ;;  %v5285_v1 = vld [vmem:[#allocation13 + $0x28] ss:$16 sps:$4 sm:$0xff]  }
 0x2e8   :  { %2728 = vmatprep.subr.bf16.mxu0 %v5206_v2  ;;  %2810 = vmatprep.subr.bf16.mxu1 %v5209_v3  ;;  %v5290_v2 = vld [vmem:[#allocation13 + $0x44] ss:$16 sps:$4 sm:$0xff]   ;;  %v5293_v3 = vld [vmem:[#allocation13 + $0x4c] ss:$16 sps:$4 sm:$0xff]  }
 0x2eb   :  { %2729 = vmatpush1.bf16.msra.mxu0 %v5204_v4  ;;  %2811 = vmatpush1.bf16.msra.mxu1 %v5207_v5  ;;  %v5288_v4 = vld [vmem:[#allocation13 + $0x40] ss:$16 sps:$4 sm:$0xff]   ;;  %v5291_v5 = vld [vmem:[#allocation13 + $0x48] ss:$16 sps:$4 sm:$0xff]  }
 0x2ec   :  { %2730 = vmatprep.subr.bf16.mxu0 %v5212_v6  ;;  %2812 = vmatprep.subr.bf16.mxu1 %v5215_v7  ;;  %v5296_v6 = vld [vmem:[#allocation13 + $0x64] ss:$16 sps:$4 sm:$0xff]   ;;  %v5299_v7 = vld [vmem:[#allocation13 + $0x6c] ss:$16 sps:$4 sm:$0xff]  }
 0x2ef   :  { %2731 = vmatpush1.bf16.msra.mxu0 %v5210_v8  ;;  %2813 = vmatpush1.bf16.msra.mxu1 %v5213_v9  ;;  %v5294_v8 = vld [vmem:[#allocation13 + $0x60] ss:$16 sps:$4 sm:$0xff]   ;;  %v5297_v9 = vld [vmem:[#allocation13 + $0x68] ss:$16 sps:$4 sm:$0xff]  }
 0x2f0   :  { %2732 = vmatprep.subr.bf16.mxu0 %v5218_v10  ;;  %2814 = vmatprep.subr.bf16.mxu1 %v5221_v11  ;;  %v5302_v10 = vld [vmem:[#allocation13 + $0x84] ss:$16 sps:$4 sm:$0xff]   ;;  %v5305_v11 = vld [vmem:[#allocation13 + $0x8c] ss:$16 sps:$4 sm:$0xff]  }
 0x2f3   :  { %2733 = vmatpush1.bf16.msra.mxu0 %v5216_v12  ;;  %2815 = vmatpush1.bf16.msra.mxu1 %v5219_v13  ;;  %v5300_v12 = vld [vmem:[#allocation13 + $0x80] ss:$16 sps:$4 sm:$0xff]   ;;  %v5303_v13 = vld [vmem:[#allocation13 + $0x88] ss:$16 sps:$4 sm:$0xff]  }
 0x2f4   :  { %2734 = vmatprep.subr.bf16.mxu0 %v5224_v14  ;;  %2816 = vmatprep.subr.bf16.mxu1 %v5227_v15  ;;  %v5308_v14 = vld [vmem:[#allocation13 + $0xa4] ss:$16 sps:$4 sm:$0xff]   ;;  %v5311_v15 = vld [vmem:[#allocation13 + $0xac] ss:$16 sps:$4 sm:$0xff]  }
 0x2f7   :  { %2735 = vmatpush1.bf16.msra.mxu0 %v5222_v16  ;;  %2817 = vmatpush1.bf16.msra.mxu1 %v5225_v18  ;;  %v5306_v16 = vld [vmem:[#allocation13 + $0xa0] ss:$16 sps:$4 sm:$0xff]   ;;  %v5309_v18 = vld [vmem:[#allocation13 + $0xa8] ss:$16 sps:$4 sm:$0xff]  }
 0x2f8   :  { %2736 = vmatprep.subr.bf16.mxu0 %v5230_v19  ;;  %2818 = vmatprep.subr.bf16.mxu1 %v5233_v20  ;;  %v5314_v19 = vld [vmem:[#allocation13 + $0xc4] ss:$16 sps:$4 sm:$0xff]   ;;  %v5317_v20 = vld [vmem:[#allocation13 + $0xcc] ss:$16 sps:$4 sm:$0xff]  }
 0x2fb   :  { %2737 = vmatpush1.bf16.msra.mxu0 %v5228_v21  ;;  %2819 = vmatpush1.bf16.msra.mxu1 %v5231_v22  ;;  %v5312_v21 = vld [vmem:[#allocation13 + $0xc0] ss:$16 sps:$4 sm:$0xff]   ;;  %v5315_v22 = vld [vmem:[#allocation13 + $0xc8] ss:$16 sps:$4 sm:$0xff]  }
 0x2fc   :  { %2738 = vmatprep.subr.bf16.mxu0 %v5236_v23  ;;  %2820 = vmatprep.subr.bf16.mxu1 %v5239_v25  ;;  %v5320_v23 = vld [vmem:[#allocation13 + $0xe4] ss:$16 sps:$4 sm:$0xff]   ;;  %v5323_v25 = vld [vmem:[#allocation13 + $0xec] ss:$16 sps:$4 sm:$0xff]  }
 0x2ff   :  { %2739 = vmatpush1.bf16.msra.mxu0 %v5234_v26  ;;  %2821 = vmatpush1.bf16.msra.mxu1 %v5237_v27  ;;  %v5318_v26 = vld [vmem:[#allocation13 + $0xe0] ss:$16 sps:$4 sm:$0xff]   ;;  %v5321_v27 = vld [vmem:[#allocation13 + $0xe8] ss:$16 sps:$4 sm:$0xff]  }
 0x300   :  { %2740 = vmatprep.subr.bf16.mxu0 %v5242_v28  ;;  %2822 = vmatprep.subr.bf16.mxu1 %v5245_v30  ;;  %v5326_v28 = vld [vmem:[#allocation13 + $0x104] ss:$16 sps:$4 sm:$0xff]   ;;  %v5329_v30 = vld [vmem:[#allocation13 + $0x10c] ss:$16 sps:$4 sm:$0xff]  }
 0x303   :  { %2741 = vmatpush1.bf16.msra.mxu0 %v5240_v17  ;;  %2823 = vmatpush1.bf16.msra.mxu1 %v5243_v31  ;;  %v5324_v17 = vld [vmem:[#allocation13 + $0x100] ss:$16 sps:$4 sm:$0xff]   ;;  %v5327_v31 = vld [vmem:[#allocation13 + $0x108] ss:$16 sps:$4 sm:$0xff]  }
 0x304   :  { %2742 = vmatprep.subr.bf16.mxu0 %v5248_v32  ;;  %2824 = vmatprep.subr.bf16.mxu1 %v5251_v34  ;;  %v5332_v32 = vld [vmem:[#allocation13 + $0x124] ss:$16 sps:$4 sm:$0xff]   ;;  %v5335_v34 = vld [vmem:[#allocation13 + $0x12c] ss:$16 sps:$4 sm:$0xff]  }
 0x307   :  { %2743 = vmatpush1.bf16.msra.mxu0 %v5246_v35  ;;  %2825 = vmatpush1.bf16.msra.mxu1 %v5249_v0  ;;  %v5330_v35 = vld [vmem:[#allocation13 + $0x120] ss:$16 sps:$4 sm:$0xff]   ;;  %v5333_v0 = vld [vmem:[#allocation13 + $0x128] ss:$16 sps:$4 sm:$0xff]  }
 0x308   :  { %2744 = vmatprep.subr.bf16.mxu0 %v5254_v36  ;;  %2826 = vmatprep.subr.bf16.mxu1 %v5257_v24  ;;  %v5338_v36 = vld [vmem:[#allocation13 + $0x144] ss:$16 sps:$4 sm:$0xff]   ;;  %v5341_v24 = vld [vmem:[#allocation13 + $0x14c] ss:$16 sps:$4 sm:$0xff]  }
 0x30b   :  { %2745 = vmatpush1.bf16.msra.mxu0 %v5252_v37  ;;  %2827 = vmatpush1.bf16.msra.mxu1 %v5255_v38  ;;  %v5336_v37 = vld [vmem:[#allocation13 + $0x140] ss:$16 sps:$4 sm:$0xff]   ;;  %v5339_v38 = vld [vmem:[#allocation13 + $0x148] ss:$16 sps:$4 sm:$0xff]  }
 0x30c   :  { %2746 = vmatprep.subr.bf16.mxu0 %v5260_v39  ;;  %2828 = vmatprep.subr.bf16.mxu1 %v5263_v40  ;;  %v5344_v39 = vld [vmem:[#allocation13 + $0x164] ss:$16 sps:$4 sm:$0xff]   ;;  %v5347_v40 = vld [vmem:[#allocation13 + $0x16c] ss:$16 sps:$4 sm:$0xff]  }
 0x30f   :  { %2747 = vmatpush1.bf16.msra.mxu0 %v5258_v42  ;;  %2829 = vmatpush1.bf16.msra.mxu1 %v5261_v44  ;;  %v5342_v42 = vld [vmem:[#allocation13 + $0x160] ss:$16 sps:$4 sm:$0xff]   ;;  %v5345_v44 = vld [vmem:[#allocation13 + $0x168] ss:$16 sps:$4 sm:$0xff]  }
 0x310   :  { %2748 = vmatprep.subr.bf16.mxu0 %v5266_v46  ;;  %2830 = vmatprep.subr.bf16.mxu1 %v5269_v47  ;;  %v5353_v46 = vld [vmem:[#allocation13 + $0x18c] ss:$16 sps:$4 sm:$0xff]   ;;  %v5348_v47 = vld [vmem:[#allocation13 + $0x180] ss:$16 sps:$4 sm:$0xff]  }
 0x313   :  { %2749 = vmatpush1.bf16.msra.mxu0 %v5264_v48  ;;  %2831 = vmatpush1.bf16.msra.mxu1 %v5267_v49  ;;  %v5351_v48 = vld [vmem:[#allocation13 + $0x188] ss:$16 sps:$4 sm:$0xff]   ;;  %v5356_v49 = vld [vmem:[#allocation13 + $0x1a4] ss:$16 sps:$4 sm:$0xff]  }
 0x314   :  { %2750 = vmatprep.subr.bf16.mxu0 %v5272_v51  ;;  %2832 = vmatprep.subr.bf16.mxu1 %v5275_v52  ;;  %v5354_v51 = vld [vmem:[#allocation13 + $0x1a0] ss:$16 sps:$4 sm:$0xff]   ;;  %v5357_v52 = vld [vmem:[#allocation13 + $0x1a8] ss:$16 sps:$4 sm:$0xff]  }
 0x317   :  { %2751 = vmatpush1.bf16.msra.mxu0 %v5270_v53  ;;  %2833 = vmatpush1.bf16.msra.mxu1 %v5273_v54  ;;  %v5362_v53 = vld [vmem:[#allocation13 + $0x1c4] ss:$16 sps:$4 sm:$0xff]   ;;  %v5365_v54 = vld [vmem:[#allocation13 + $0x1cc] ss:$16 sps:$4 sm:$0xff]  }
 0x318   :  { %3641 = vmatprep.subr.bf16.mxu0 %v5278_v29  ;;  %3723 = vmatprep.subr.bf16.mxu1 %v5281_v58  ;;  %v5363_v29 = vld [vmem:[#allocation13 + $0x1c8] ss:$16 sps:$4 sm:$0xff]   ;;  %v5368_v58 = vld [vmem:[#allocation13 + $0x1e4] ss:$16 sps:$4 sm:$0xff]  }
 0x31a   :  { %2753 = vmatmul.mubr.bf16.vlgmr.msra.gmra.mrb[16].mxu0 %v1887_v61  ;;  %2835 = vmatmul.mubr.bf16.vlgmr.msra.gmra.mrb[16].mxu1 %v1887_v61  ;;  %v5369_v61 = vld [vmem:[#allocation13 + $0x1e8] ss:$16 sps:$4 sm:$0xff]  }
 0x31b   :  { %3642 = vmatpush1.bf16.msra.mxu0 %v5276_v59  ;;  %3724 = vmatpush1.bf16.msra.mxu1 %v5279_v60  ;;  %v5371_v59 = vld [vmem:[#allocation13 + $0x1ec] ss:$16 sps:$4 sm:$0xff]   ;;  %v5366_v60 = vld [vmem:[#allocation13 + $0x1e0] ss:$16 sps:$4 sm:$0xff]  }
 0x31c   :  { %3643 = vmatprep.subr.bf16.mxu0 %v5284_v33  ;;  %3725 = vmatprep.subr.bf16.mxu1 %v5287_v62  ;;  %v5374_v33 = vld [vmem:[#allocation13 + $0x204] ss:$16 sps:$4 sm:$0xff]   ;;  %v5377_v62 = vld [vmem:[#allocation13 + $0x20c] ss:$16 sps:$4 sm:$0xff]  }
 0x31f   :  { %3644 = vmatpush1.bf16.msra.mxu0 %v5282_v63  ;;  %3726 = vmatpush1.bf16.msra.mxu1 %v5285_v1  ;;  %v5952_v63 = vld [vmem:[%s5995_s8] sm:$0xf] }
 0x320   :  { %3645 = vmatprep.subr.bf16.mxu0 %v5290_v2  ;;  %3727 = vmatprep.subr.bf16.mxu1 %v5293_v3  ;;  %v2022_v1 = vrot.slane %v5952_v63, %v5915_v41  ;;  %v2026_v2 = vrot.slane %v5952_v63, %v5920_v43  ;;  %v2034_v3 = vrot.slane %v5952_v63, %v5926_v57 }
 0x323   :  { %3646 = vmatpush1.bf16.msra.mxu0 %v5288_v4  ;;  %3728 = vmatpush1.bf16.msra.mxu1 %v5291_v5 }
 0x324   :  { %3647 = vmatprep.subr.bf16.mxu0 %v5296_v6  ;;  %3729 = vmatprep.subr.bf16.mxu1 %v5299_v7 }
 0x327   :  { %3648 = vmatpush1.bf16.msra.mxu0 %v5294_v8  ;;  %3730 = vmatpush1.bf16.msra.mxu1 %v5297_v9 }
 0x328   :  { %3649 = vmatprep.subr.bf16.mxu0 %v5302_v10  ;;  %3731 = vmatprep.subr.bf16.mxu1 %v5305_v11 }
 0x32b   :  { %3650 = vmatpush1.bf16.msra.mxu0 %v5300_v12  ;;  %3732 = vmatpush1.bf16.msra.mxu1 %v5303_v13 }
 0x32c   :  { %3651 = vmatprep.subr.bf16.mxu0 %v5308_v14  ;;  %3733 = vmatprep.subr.bf16.mxu1 %v5311_v15 }
 0x32f   :  { %3652 = vmatpush1.bf16.msra.mxu0 %v5306_v16  ;;  %3734 = vmatpush1.bf16.msra.mxu1 %v5309_v18 }
 0x330   :  { %3653 = vmatprep.subr.bf16.mxu0 %v5314_v19  ;;  %3735 = vmatprep.subr.bf16.mxu1 %v5317_v20  ;;  %v5372_v20 = vld [vmem:[#allocation13 + $0x200] ss:$16 sps:$4 sm:$0xff]  }
 0x333   :  { %3654 = vmatpush1.bf16.msra.mxu0 %v5312_v21  ;;  %3736 = vmatpush1.bf16.msra.mxu1 %v5315_v22  ;;  %v5375_v21 = vld [vmem:[#allocation13 + $0x208] ss:$16 sps:$4 sm:$0xff]  }
 0x334   :  { %3655 = vmatprep.subr.bf16.mxu0 %v5320_v23  ;;  %3737 = vmatprep.subr.bf16.mxu1 %v5323_v25  ;;  %v5380_v23 = vld [vmem:[#allocation13 + $0x224] ss:$16 sps:$4 sm:$0xff]   ;;  %v5383_v25 = vld [vmem:[#allocation13 + $0x22c] ss:$16 sps:$4 sm:$0xff]  }
 0x337   :  { %3656 = vmatpush1.bf16.msra.mxu0 %v5318_v26  ;;  %3738 = vmatpush1.bf16.msra.mxu1 %v5321_v27  ;;  %v5378_v27 = vld [vmem:[#allocation13 + $0x220] ss:$16 sps:$4 sm:$0xff]  }
 0x338   :  { %3657 = vmatprep.subr.bf16.mxu0 %v5326_v28  ;;  %3739 = vmatprep.subr.bf16.mxu1 %v5329_v30  ;;  %v5381_v28 = vld [vmem:[#allocation13 + $0x228] ss:$16 sps:$4 sm:$0xff]   ;;  %v5386_v30 = vld [vmem:[#allocation13 + $0x244] ss:$16 sps:$4 sm:$0xff]  }
 0x33b   :  { %3658 = vmatpush1.bf16.msra.mxu0 %v5324_v17  ;;  %3740 = vmatpush1.bf16.msra.mxu1 %v5327_v31  ;;  %v5389_v17 = vld [vmem:[#allocation13 + $0x24c] ss:$16 sps:$4 sm:$0xff]   ;;  %v5384_v31 = vld [vmem:[#allocation13 + $0x240] ss:$16 sps:$4 sm:$0xff]  }
 0x33c   :  { %3659 = vmatprep.subr.bf16.mxu0 %v5332_v32  ;;  %3741 = vmatprep.subr.bf16.mxu1 %v5335_v34  ;;  %v5387_v32 = vld [vmem:[#allocation13 + $0x248] ss:$16 sps:$4 sm:$0xff]   ;;  %v5392_v34 = vld [vmem:[#allocation13 + $0x264] ss:$16 sps:$4 sm:$0xff]  }
 0x33f   :  { %3660 = vmatpush1.bf16.msra.mxu0 %v5330_v35  ;;  %3742 = vmatpush1.bf16.msra.mxu1 %v5333_v0  ;;  %v5395_v35 = vld [vmem:[#allocation13 + $0x26c] ss:$16 sps:$4 sm:$0xff]   ;;  %v5390_v0 = vld [vmem:[#allocation13 + $0x260] ss:$16 sps:$4 sm:$0xff]  }
 0x340   :  { %3661 = vmatprep.subr.bf16.mxu0 %v5338_v36  ;;  %3743 = vmatprep.subr.bf16.mxu1 %v5341_v24  ;;  %v5393_v36 = vld [vmem:[#allocation13 + $0x268] ss:$16 sps:$4 sm:$0xff]   ;;  %v5398_v24 = vld [vmem:[#allocation13 + $0x284] ss:$16 sps:$4 sm:$0xff]  }
 0x343   :  { %3662 = vmatpush1.bf16.msra.mxu0 %v5336_v37  ;;  %3744 = vmatpush1.bf16.msra.mxu1 %v5339_v38  ;;  %v5401_v37 = vld [vmem:[#allocation13 + $0x28c] ss:$16 sps:$4 sm:$0xff]   ;;  %v5396_v38 = vld [vmem:[#allocation13 + $0x280] ss:$16 sps:$4 sm:$0xff]  }
 0x344   :  { %3663 = vmatprep.subr.bf16.mxu0 %v5344_v39  ;;  %3745 = vmatprep.subr.bf16.mxu1 %v5347_v40  ;;  %v5399_v39 = vld [vmem:[#allocation13 + $0x288] ss:$16 sps:$4 sm:$0xff]   ;;  %v5404_v40 = vld [vmem:[#allocation13 + $0x2a4] ss:$16 sps:$4 sm:$0xff]  }
 0x347   :  { %3664 = vmatpush1.bf16.msra.mxu0 %v5342_v42  ;;  %3746 = vmatpush1.bf16.msra.mxu1 %v5345_v44  ;;  %v5407_v42 = vld [vmem:[#allocation13 + $0x2ac] ss:$16 sps:$4 sm:$0xff]   ;;  %v5402_v44 = vld [vmem:[#allocation13 + $0x2a0] ss:$16 sps:$4 sm:$0xff]  }
 0x348   :  { %3665 = vmatprep.subr.bf16.mxu0 %v5350_v45  ;;  %3747 = vmatprep.subr.bf16.mxu1 %v5353_v46  ;;  %v5405_v45 = vld [vmem:[#allocation13 + $0x2a8] ss:$16 sps:$4 sm:$0xff]   ;;  %v5410_v46 = vld [vmem:[#allocation13 + $0x2c4] ss:$16 sps:$4 sm:$0xff]  }
 0x34b   :  { %3666 = vmatpush1.bf16.msra.mxu0 %v5348_v47  ;;  %3748 = vmatpush1.bf16.msra.mxu1 %v5351_v48  ;;  %v5413_v47 = vld [vmem:[#allocation13 + $0x2cc] ss:$16 sps:$4 sm:$0xff]   ;;  %v5408_v48 = vld [vmem:[#allocation13 + $0x2c0] ss:$16 sps:$4 sm:$0xff]  }
 0x34c   :  { %3667 = vmatprep.subr.bf16.mxu0 %v5356_v49  ;;  %3749 = vmatprep.subr.bf16.mxu1 %v5359_v50  ;;  %v5411_v49 = vld [vmem:[#allocation13 + $0x2c8] ss:$16 sps:$4 sm:$0xff]   ;;  %v5416_v50 = vld [vmem:[#allocation13 + $0x2e4] ss:$16 sps:$4 sm:$0xff]  }
 0x34f   :  { %3668 = vmatpush1.bf16.msra.mxu0 %v5354_v51  ;;  %3750 = vmatpush1.bf16.msra.mxu1 %v5357_v52  ;;  %v5419_v51 = vld [vmem:[#allocation13 + $0x2ec] ss:$16 sps:$4 sm:$0xff]   ;;  %v5414_v52 = vld [vmem:[#allocation13 + $0x2e0] ss:$16 sps:$4 sm:$0xff]  }
 0x350   :  { %3669 = vmatprep.subr.bf16.mxu0 %v5362_v53  ;;  %3751 = vmatprep.subr.bf16.mxu1 %v5365_v54  ;;  %v5417_v53 = vld [vmem:[#allocation13 + $0x2e8] ss:$16 sps:$4 sm:$0xff]   ;;  %v5422_v54 = vld [vmem:[#allocation13 + $0x304] ss:$16 sps:$4 sm:$0xff]  }
 0x353   :  { %3670 = vmatpush1.bf16.msra.mxu0 %v5360_v56  ;;  %3752 = vmatpush1.bf16.msra.mxu1 %v5363_v29  ;;  %v5425_v56 = vld [vmem:[#allocation13 + $0x30c] ss:$16 sps:$4 sm:$0xff]   ;;  %v5420_v29 = vld [vmem:[#allocation13 + $0x300] ss:$16 sps:$4 sm:$0xff]  }
 0x354   :  { %3671 = vmatprep.subr.bf16.mxu0 %v5368_v58  ;;  %3753 = vmatprep.subr.bf16.mxu1 %v5371_v59  ;;  %v5423_v58 = vld [vmem:[#allocation13 + $0x308] ss:$16 sps:$4 sm:$0xff]   ;;  %v5428_v59 = vld [vmem:[#allocation13 + $0x324] ss:$16 sps:$4 sm:$0xff]  }
 0x357   :  { %3672 = vmatpush1.bf16.msra.mxu0 %v5366_v60  ;;  %3754 = vmatpush1.bf16.msra.mxu1 %v5369_v61  ;;  %v5431_v60 = vld [vmem:[#allocation13 + $0x32c] ss:$16 sps:$4 sm:$0xff]   ;;  %v5426_v61 = vld [vmem:[#allocation13 + $0x320] ss:$16 sps:$4 sm:$0xff]  }
 0x358   :  { %3682 = vmatprep.subr.bf16.mxu0 %v5374_v33  ;;  %3764 = vmatprep.subr.bf16.mxu1 %v5377_v62  ;;  %v5429_v33 = vld [vmem:[#allocation13 + $0x328] ss:$16 sps:$4 sm:$0xff]   ;;  %v5434_v62 = vld [vmem:[#allocation13 + $0x344] ss:$16 sps:$4 sm:$0xff]  }
 0x3ed   :  { %v2754_v4 = vpop.f32.mrb[16].mxu0  ;;  %v5960_v5 = vpop.f32.mrb[16].mxu1 }
 0x3ee   :  { %v4726_v6 = vadd.f32 %v2754_v4, %v2022_v1  ;;  %v2756_v7 = vpop.f32.mrb[17].mxu0  ;;  %v2838_v8 = vpop.f32.mrb[17].mxu1  ;;  %v5437_v1 = vld [vmem:[#allocation13 + $0x34c] ss:$16 sps:$4 sm:$0xff]   ;;  %v5440_v4 = vld [vmem:[#allocation13 + $0x364] ss:$16 sps:$4 sm:$0xff]  }
 0x3ef   :  { %v4727_v9 = vadd.f32 %v2756_v7, %v2026_v2  ;;  %v4729_v10 = vadd.f32 %v2838_v8, %v2034_v3  ;;  %v2758_v11 = vpop.f32.mrb[18].mxu0  ;;  %v2840_v12 = vpop.f32.mrb[18].mxu1  ;;  %v5432_v2 = vld [vmem:[#allocation13 + $0x340] ss:$16 sps:$4 sm:$0xff]   ;;  %v5435_v3 = vld [vmem:[#allocation13 + $0x348] ss:$16 sps:$4 sm:$0xff]  }
 0x3f0   :  { %v2843_v13 = vmax.f32 %v4726_v6, 0.0  ;;  %v2759_v14 = vpop.f32.mrb[19].mxu0  ;;  %v2841_v15 = vpop.f32.mrb[19].mxu1  ;;  %v5443_v6 = vld [vmem:[#allocation13 + $0x36c] ss:$16 sps:$4 sm:$0xff]  }
 0x3f1   :  { %v2844_v16 = vmax.f32 %v4727_v9, 0.0  ;;  %v2846_v18 = vmax.f32 %v4729_v10, 0.0  ;;  %v5438_v7 = vld [vmem:[#allocation13 + $0x360] ss:$16 sps:$4 sm:$0xff]   ;;  %v5441_v8 = vld [vmem:[#allocation13 + $0x368] ss:$16 sps:$4 sm:$0xff]  }
 0x3f2   :  { %v2847_v22 = vpack.c.bf16 %v2843_v13, %v2843_v13  ;;  %v5446_v9 = vld [vmem:[#allocation13 + $0x384] ss:$16 sps:$4 sm:$0xff]   ;;  %v5449_v10 = vld [vmem:[#allocation13 + $0x38c] ss:$16 sps:$4 sm:$0xff]   ;;  %v5444_v11 = vld [vmem:[#allocation13 + $0x380] ss:$16 sps:$4 sm:$0xff]  }
 0x3f3   :  { %v2848_v19 = vpack.c.bf16 %v2844_v16, %v2844_v16  ;;  %v2850_v26 = vpack.c.bf16 %v2846_v18, %v2846_v18  ;;  %v5447_v12 = vld [vmem:[#allocation13 + $0x388] ss:$16 sps:$4 sm:$0xff]   ;;  %v5452_v13 = vld [vmem:[#allocation13 + $0x3a4] ss:$16 sps:$4 sm:$0xff]   ;;  %v5455_v14 = vld [vmem:[#allocation13 + $0x3ac] ss:$16 sps:$4 sm:$0xff]   ;;  %v2030_v18 = vrot.slane %v5952_v63, %v5924_v55 }
 0x3f4   :  { %v5450_v15 = vld [vmem:[#allocation13 + $0x3a0] ss:$16 sps:$4 sm:$0xff]   ;;  %v5453_v16 = vld [vmem:[#allocation13 + $0x3a8] ss:$16 sps:$4 sm:$0xff]  }
 0x3f5   :  { %3673 = vmatprep.mubr.bf16.mxu0 %v2848_v19  ;;  %3755 = vmatprep.mubr.bf16.mxu1 %v2848_v19  ;;  %v5458_v19 = vld [vmem:[#allocation13 + $0x3c4] ss:$16 sps:$4 sm:$0xff]  }
 0x3f6   :  { %3674 = vmatmul.mubr.bf16.vlgmr.msra.gmra.mrb[20].mxu0 %v2847_v22  ;;  %3756 = vmatmul.mubr.bf16.vlgmr.msra.gmra.mrb[20].mxu1 %v2847_v22  ;;  %v5459_v22 = vld [vmem:[#allocation13 + $0x3c8] ss:$16 sps:$4 sm:$0xff]   ;;  %v5468_v63 = vld [vmem:[#allocation14 + $0x40] sm:$0xff]  }
 0x3f7   :  { %3683 = vmatpush1.bf16.msra.mxu0 %v5372_v20  ;;  %3765 = vmatpush1.bf16.msra.mxu1 %v5375_v21  ;;  %v5461_v20 = vld [vmem:[#allocation13 + $0x3cc] ss:$16 sps:$4 sm:$0xff]   ;;  %v5456_v21 = vld [vmem:[#allocation13 + $0x3c0] ss:$16 sps:$4 sm:$0xff]  }
 0x3f8   :  { %3714 = vmatprep.mubr.bf16.mxu0 %v2850_v26  ;;  %3796 = vmatprep.mubr.bf16.mxu1 %v2850_v26  ;;  %v5467_v26 = vld [vmem:[#allocation13 + $0x3ec] ss:$16 sps:$4 sm:$0xff]  }
 0x3f9   :  { %3684 = vmatprep.subr.bf16.mxu0 %v5380_v23  ;;  %3766 = vmatprep.subr.bf16.mxu1 %v5383_v25  ;;  %v4728_v23 = vadd.f32 %v5960_v5, %v2030_v18  ;;  %v5464_v25 = vld [vmem:[#allocation13 + $0x3e4] ss:$16 sps:$4 sm:$0xff]   ;;  %v5472_v5 = vld [vmem:[#allocation14 + $0x48] sm:$0xff]  }
 0x3fb   :  { %3685 = vmatpush1.bf16.msra.mxu0 %v5378_v27  ;;  %3767 = vmatpush1.bf16.msra.mxu1 %v5381_v28  ;;  %v5462_v27 = vld [vmem:[#allocation13 + $0x3e0] ss:$16 sps:$4 sm:$0xff]   ;;  %v5465_v28 = vld [vmem:[#allocation13 + $0x3e8] ss:$16 sps:$4 sm:$0xff]  }
 0x3fc   :  { %3686 = vmatprep.subr.bf16.mxu0 %v5386_v30  ;;  %3768 = vmatprep.subr.bf16.mxu1 %v5389_v17  ;;  %v2845_v30 = vmax.f32 %v4728_v23, 0.0  ;;  %v5469_v17 = vld [vmem:[#allocation14 + $0xc0] sm:$0xff]  }
 0x3ff   :  { %3687 = vmatpush1.bf16.msra.mxu0 %v5384_v31  ;;  %3769 = vmatpush1.bf16.msra.mxu1 %v5387_v32  ;;  %v5470_v31 = vld [vmem:[#allocation14] sm:$0xff]  }
 0x400   :  { %3688 = vmatprep.subr.bf16.mxu0 %v5392_v34  ;;  %3770 = vmatprep.subr.bf16.mxu1 %v5395_v35  ;;  %v5471_v32 = vld [vmem:[#allocation14 + $0x80] sm:$0xff]   ;;  %v2849_v34 = vpack.c.bf16 %v2845_v30, %v2845_v30  ;;  %v5473_v35 = vld [vmem:[#allocation14 + $0xc8] sm:$0xff]  }
 0x403   :  { %3689 = vmatpush1.bf16.msra.mxu0 %v5390_v0  ;;  %3771 = vmatpush1.bf16.msra.mxu1 %v5393_v36  ;;  %v5474_v0 = vld [vmem:[#allocation14 + $0x8] sm:$0xff]  }
 0x404   :  { %3690 = vmatprep.subr.bf16.mxu0 %v5398_v24  ;;  %3772 = vmatprep.subr.bf16.mxu1 %v5401_v37  ;;  %v5475_v36 = vld [vmem:[#allocation14 + $0x88] sm:$0xff]   ;;  %v5476_v24 = vld [vmem:[#allocation14 + $0x50] sm:$0xff]  }
 0x405   :  { %v5477_v37 = vld [vmem:[#allocation14 + $0xd0] sm:$0xff]  }
 0x407   :  { %3691 = vmatpush1.bf16.msra.mxu0 %v5396_v38  ;;  %3773 = vmatpush1.bf16.msra.mxu1 %v5399_v39  ;;  %v5478_v38 = vld [vmem:[#allocation14 + $0x10] sm:$0xff]  }
 0x408   :  { %3692 = vmatprep.subr.bf16.mxu0 %v5404_v40  ;;  %3774 = vmatprep.subr.bf16.mxu1 %v5407_v42  ;;  %v5479_v39 = vld [vmem:[#allocation14 + $0x90] sm:$0xff]   ;;  %v5480_v40 = vld [vmem:[#allocation14 + $0x58] sm:$0xff]  }
 0x409   :  { %v5481_v42 = vld [vmem:[#allocation14 + $0xd8] sm:$0xff]  }
 0x40b   :  { %3693 = vmatpush1.bf16.msra.mxu0 %v5402_v44  ;;  %3775 = vmatpush1.bf16.msra.mxu1 %v5405_v45  ;;  %v5482_v44 = vld [vmem:[#allocation14 + $0x18] sm:$0xff]  }
 0x40c   :  { %3694 = vmatprep.subr.bf16.mxu0 %v5410_v46  ;;  %3776 = vmatprep.subr.bf16.mxu1 %v5413_v47  ;;  %v5483_v45 = vld [vmem:[#allocation14 + $0x98] sm:$0xff]   ;;  %v5484_v46 = vld [vmem:[#allocation14 + $0x60] sm:$0xff]  }
 0x40d   :  { %v5485_v47 = vld [vmem:[#allocation14 + $0xe0] sm:$0xff]  }
 0x40f   :  { %3695 = vmatpush1.bf16.msra.mxu0 %v5408_v48  ;;  %3777 = vmatpush1.bf16.msra.mxu1 %v5411_v49  ;;  %v5486_v48 = vld [vmem:[#allocation14 + $0x20] sm:$0xff]  }
 0x410   :  { %3696 = vmatprep.subr.bf16.mxu0 %v5416_v50  ;;  %3778 = vmatprep.subr.bf16.mxu1 %v5419_v51  ;;  %v5487_v49 = vld [vmem:[#allocation14 + $0xa0] sm:$0xff]   ;;  %v5488_v50 = vld [vmem:[#allocation14 + $0x68] sm:$0xff]  }
 0x411   :  { %v5489_v51 = vld [vmem:[#allocation14 + $0xe8] sm:$0xff]  }
 0x413   :  { %3697 = vmatpush1.bf16.msra.mxu0 %v5414_v52  ;;  %3779 = vmatpush1.bf16.msra.mxu1 %v5417_v53  ;;  %v5490_v52 = vld [vmem:[#allocation14 + $0x28] sm:$0xff]  }
 0x414   :  { %3698 = vmatprep.subr.bf16.mxu0 %v5422_v54  ;;  %3780 = vmatprep.subr.bf16.mxu1 %v5425_v56  ;;  %v5491_v53 = vld [vmem:[#allocation14 + $0xa8] sm:$0xff]   ;;  %v5492_v54 = vld [vmem:[#allocation14 + $0x70] sm:$0xff]  }
 0x415   :  { %v5493_v56 = vld [vmem:[#allocation14 + $0xf0] sm:$0xff]  }
 0x417   :  { %3699 = vmatpush1.bf16.msra.mxu0 %v5420_v29  ;;  %3781 = vmatpush1.bf16.msra.mxu1 %v5423_v58  ;;  %v5494_v29 = vld [vmem:[#allocation14 + $0x30] sm:$0xff]  }
 0x418   :  { %3700 = vmatprep.subr.bf16.mxu0 %v5428_v59  ;;  %3782 = vmatprep.subr.bf16.mxu1 %v5431_v60  ;;  %v5495_v58 = vld [vmem:[#allocation14 + $0xb0] sm:$0xff]   ;;  %v5496_v59 = vld [vmem:[#allocation14 + $0x78] sm:$0xff]  }
 0x419   :  { %v5497_v60 = vld [vmem:[#allocation14 + $0xf8] sm:$0xff]  }
 0x41b   :  { %3701 = vmatpush1.bf16.msra.mxu0 %v5426_v61  ;;  %3783 = vmatpush1.bf16.msra.mxu1 %v5429_v33  ;;  %v5498_v61 = vld [vmem:[#allocation14 + $0x38] sm:$0xff]  }
 0x41c   :  { %3702 = vmatprep.subr.bf16.mxu0 %v5434_v62  ;;  %3784 = vmatprep.subr.bf16.mxu1 %v5437_v1  ;;  %v5499_v33 = vld [vmem:[#allocation14 + $0xb8] sm:$0xff]   ;;  %v2979_v62 = vld [vmem:[%s5997_s10] sm:$0xf] }
 0x41d   :  { %v2984_v1 = vrot.slane %v2979_v62, %v5915_v41 }
 0x41f   :  { %3703 = vmatpush1.bf16.msra.mxu0 %v5432_v2  ;;  %3785 = vmatpush1.bf16.msra.mxu1 %v5435_v3  ;;  %v2992_v2 = vrot.slane %v2979_v62, %v5924_v55  ;;  %v2988_v3 = vrot.slane %v2979_v62, %v5920_v43 }
 0x420   :  { %3704 = vmatprep.subr.bf16.mxu0 %v5440_v4  ;;  %3786 = vmatprep.subr.bf16.mxu1 %v5443_v6  ;;  %v2996_v4 = vrot.slane %v2979_v62, %v5926_v57 }
 0x423   :  { %3705 = vmatpush1.bf16.msra.mxu0 %v5438_v7  ;;  %3787 = vmatpush1.bf16.msra.mxu1 %v5441_v8 }
 0x424   :  { %3706 = vmatprep.subr.bf16.mxu0 %v5446_v9  ;;  %3788 = vmatprep.subr.bf16.mxu1 %v5449_v10 }
 0x427   :  { %3707 = vmatpush1.bf16.msra.mxu0 %v5444_v11  ;;  %3789 = vmatpush1.bf16.msra.mxu1 %v5447_v12 }
 0x428   :  { %3708 = vmatprep.subr.bf16.mxu0 %v5452_v13  ;;  %3790 = vmatprep.subr.bf16.mxu1 %v5455_v14 }
 0x42b   :  { %3709 = vmatpush1.bf16.msra.mxu0 %v5450_v15  ;;  %3791 = vmatpush1.bf16.msra.mxu1 %v5453_v16 }
 0x42c   :  { %3710 = vmatprep.subr.bf16.mxu0 %v5458_v19  ;;  %3792 = vmatprep.subr.bf16.mxu1 %v5461_v20 }
 0x42f   :  { %3711 = vmatpush1.bf16.msra.mxu0 %v5456_v21  ;;  %3793 = vmatpush1.bf16.msra.mxu1 %v5459_v22 }
 0x430   :  { %3712 = vmatprep.subr.bf16.mxu0 %v5464_v25  ;;  %3794 = vmatprep.subr.bf16.mxu1 %v5467_v26  ;;  %v4645_v26 = vld [vmem:[%s5999_s12] ss:$0 sm:$0xff] }
 0x433   :  { %3713 = vmatpush1.bf16.msra.mxu0 %v5462_v27  ;;  %3795 = vmatpush1.bf16.msra.mxu1 %v5465_v28 }
 0x434   :  { %4678 = vmatprep.subr.bf16.mxu0 %v5468_v63  ;;  %4700 = vmatprep.subr.bf16.mxu1 %v5469_v17 }
 0x436   :  { %3715 = vmatmul.mubr.bf16.vlgmr.msra.gmra.mrb[20].mxu0 %v2849_v34  ;;  %3797 = vmatmul.mubr.bf16.vlgmr.msra.gmra.mrb[20].mxu1 %v2849_v34 }
 0x437   :  { %4679 = vmatpush3.bf16.msra.mxu0 %v5470_v31  ;;  %4701 = vmatpush3.bf16.msra.mxu1 %v5471_v32 }
 0x438   :  { %4680 = vmatprep.subr.bf16.mxu0 %v5472_v5  ;;  %4702 = vmatprep.subr.bf16.mxu1 %v5473_v35 }
 0x43b   :  { %4681 = vmatpush3.bf16.msra.mxu0 %v5474_v0  ;;  %4703 = vmatpush3.bf16.msra.mxu1 %v5475_v36 }
 0x43c   :  { %4682 = vmatprep.subr.bf16.mxu0 %v5476_v24  ;;  %4704 = vmatprep.subr.bf16.mxu1 %v5477_v37 }
 0x43f   :  { %4683 = vmatpush3.bf16.msra.mxu0 %v5478_v38  ;;  %4705 = vmatpush3.bf16.msra.mxu1 %v5479_v39 }
 0x440   :  { %4684 = vmatprep.subr.bf16.mxu0 %v5480_v40  ;;  %4706 = vmatprep.subr.bf16.mxu1 %v5481_v42 }
 0x443   :  { %4685 = vmatpush3.bf16.msra.mxu0 %v5482_v44  ;;  %4707 = vmatpush3.bf16.msra.mxu1 %v5483_v45 }
 0x444   :  { %4686 = vmatprep.subr.bf16.mxu0 %v5484_v46  ;;  %4708 = vmatprep.subr.bf16.mxu1 %v5485_v47 }
 0x447   :  { %4687 = vmatpush3.bf16.msra.mxu0 %v5486_v48  ;;  %4709 = vmatpush3.bf16.msra.mxu1 %v5487_v49 }
 0x448   :  { %4688 = vmatprep.subr.bf16.mxu0 %v5488_v50  ;;  %4710 = vmatprep.subr.bf16.mxu1 %v5489_v51 }
 0x44b   :  { %4689 = vmatpush3.bf16.msra.mxu0 %v5490_v52  ;;  %4711 = vmatpush3.bf16.msra.mxu1 %v5491_v53 }
 0x44c   :  { %4690 = vmatprep.subr.bf16.mxu0 %v5492_v54  ;;  %4712 = vmatprep.subr.bf16.mxu1 %v5493_v56 }
 0x44f   :  { %4691 = vmatpush3.bf16.msra.mxu0 %v5494_v29  ;;  %4713 = vmatpush3.bf16.msra.mxu1 %v5495_v58 }
 0x450   :  { %4692 = vmatprep.subr.bf16.mxu0 %v5496_v59  ;;  %4714 = vmatprep.subr.bf16.mxu1 %v5497_v60 }
 0x453   :  { %4693 = vmatpush3.bf16.msra.mxu0 %v5498_v61  ;;  %4715 = vmatpush3.bf16.msra.mxu1 %v5499_v33 }
 0x509   :  { %v3716_v6 = vpop.f32.mrb[20].mxu0  ;;  %v3798_v7 = vpop.f32.mrb[20].mxu1 }
 0x50a   :  { %v4730_v8 = vadd.f32 %v3716_v6, %v2984_v1  ;;  %v4732_v9 = vadd.f32 %v3798_v7, %v2992_v2  ;;  %v3718_v10 = vpop.f32.mrb[21].mxu0  ;;  %v3800_v11 = vpop.f32.mrb[21].mxu1 }
 0x50b   :  { %v4731_v12 = vadd.f32 %v3718_v10, %v2988_v3  ;;  %v4733_v13 = vadd.f32 %v3800_v11, %v2996_v4  ;;  %v3720_v14 = vpop.f32.mrb[22].mxu0  ;;  %v3802_v15 = vpop.f32.mrb[22].mxu1 }
 0x50c   :  { %v3805_v16 = vmax.f32 %v4730_v8, 0.0  ;;  %v3807_v18 = vmax.f32 %v4732_v9, 0.0  ;;  %v3721_v19 = vpop.f32.mrb[23].mxu0  ;;  %v3803_v41 = vpop.f32.mrb[23].mxu1 }
 0x50d   :  { %v3806_v20 = vmax.f32 %v4731_v12, 0.0  ;;  %v3808_v55 = vmax.f32 %v4733_v13, 0.0 }
 0x50e   :  { %v3809_v22 = vpack.c.bf16 %v3805_v16, %v3805_v16  ;;  %v3811_v57 = vpack.c.bf16 %v3807_v18, %v3807_v18 }
 0x50f   :  { %v3810_v21 = vpack.c.bf16 %v3806_v20, %v3806_v20  ;;  %v3812_v43 = vpack.c.bf16 %v3808_v55, %v3808_v55 }
 0x511   :  { %4108 = vmatprep.mubr.bf16.mxu0 %v3810_v21  ;;  %4148 = vmatprep.mubr.bf16.mxu1 %v3812_v43 }
 0x512   :  { %4109 = vmatmul.mubr.bf16.vlgmr.msra.gmra.mrb[24].mxu0 %v3809_v22  ;;  %4149 = vmatmul.mubr.bf16.vlgmr.msra.gmra.mrb[24].mxu1 %v3811_v57 }
 0x5e5   :  { %v4694_v23 = vpop.f32.mrb[24].mxu0  ;;  %v4716_v25 = vpop.f32.mrb[24].mxu1 }
 0x5e6   :  { %v4695_v27 = vpop.f32.mrb[25].mxu0  ;;  %v4717_v28 = vpop.f32.mrb[25].mxu1 }
 0x5e7   :  { %v4696_v30 = vadd.f32 %v4695_v27, %v4694_v23  ;;  %v4718_v63 = vadd.f32 %v4717_v28, %v4716_v25  ;;  %v4697_v17 = vpop.f32.mrb[26].mxu0  ;;  %v4719_v31 = vpop.f32.mrb[26].mxu1 }
 0x5e8   :  { %v4698_v32 = vpop.f32.mrb[27].mxu0  ;;  %v4720_v34 = vpop.f32.mrb[27].mxu1 }
 0x5e9   :  { %v4111_v5 = vadd.f32 %v4696_v30, %v4645_v26 }
 0x5eb   :  { %v4151_v35 = vadd.f32 %v4718_v63, %v4111_v5 }
 0x5ed   :  { %v4156_v0 = vmax.f32 %v4151_v35, 0.0 }
 0x5ef   :  { %4157 = vst [vmem:[#allocation16] sm:$0xff] %v4156_v0 }
 0x5f0   :  { %5687 = shalt.err (!%p5684_p12)
}
 0x5f1   :  { %s5688_s19 = scalar_lea.hbm %s6000_s13, 128 }
 0x5f2   :  { %p5689_p13 = scmp.ne.s32.totalorder %s6000_s13, %s5688_s19  ;;  %p5692_p0 = scmp.lt.u32.totalorder %s5688_s19, %s6000_s13 }
 0x5f4   :  { %p5694_p1 = pnand %p5692_p0, %p5689_p13 }
 0x5f6   :  { %5697 = shalt.err (!%p5694_p1)
}
 0x5f7   :  { %4167 = dma.vmem_to_hbm [thread:$0]  %s4165_s18, 128, %s6000_s13, [#allocation4]  }
 0x5f8   :  { %5708 = dma.done.wait [#allocation4], 128  }
 0x5f9   :  { %5709 = vsyncadd [#allocation4], 4294967168 }
 0x5fa   :  { %4171 = vsyncpa [#allocation3], 1 }
 0x5fb   :  { %4172 = vsyncpa [#allocation6], 1 }
 0x5fc   :  { %4173 = vsyncpa [#allocation9], 1 }
 0x5fd   :  { %4174 = vsyncpa [#allocation12], 1 }
 0x5fe   :  { %4175 = vsyncpa [#allocation15], 1 }
 0x5ff   :  { %4176 = vsyncpa [#allocation4], 1 }

</bundles_post_ra>
